<compile_context>
chip_gen: v5e
topology: v5e:2x2
jax: 0.10.0
libtpu: 0.0.40
codegen_flags: <defaults>
</compile_context>

<pallas_src>
import jax
import jax.numpy as jnp
from jax.experimental import pallas as pl
from jax.experimental.pallas import tpu as pltpu

NEG = -1e30  # "minus infinity" for padded tag slots (finite -> no inf/NaN hazards)


# --------------------------------------------------------------------------- kernel

def make_kernel(T, B):
    def kernel(x_ref,          # (T*B, E)   f32  embeddings (time-major rows)
               wih_ref,        # (E, 8H)    gate-interleaved [i_f i_b|f_f f_b|g_f g_b|o_f o_b]
               b_ih_ref,       # (1, 8H)
               whh_ref,        # (2H, 8H)   block-diagonal recurrent weights
               wd_ref,         # (2H, Kp)   dense weights, tag axis lane-padded
               bd_ref,         # (1, Kp)
               trans_ref,      # (Kn, Kp)   trans[next, prev], Kn = 8-sublane padded
               start_ref,      # (1, Kp)
               end_ref,        # (1, Kp)
               tags_ref,       # out (B, T) int32
               h_scr):         # scratch (T*B, 2H) f32
        H2 = whh_ref.shape[0]
        H = H2 // 2
        Kp = wd_ref.shape[1]
        Kn = trans_ref.shape[0]

        # ---- 1) hoisted input projection: both directions, all gates, ONE wide matmul
        gates_x = (jnp.dot(x_ref[...], wih_ref[...],
                           preferred_element_type=jnp.float32)
                   + b_ih_ref[...])                                   # (T*B, 8H)

        whh = whh_ref[...]                                            # (2H, 8H)

        # lane mask: within each 2H gate chunk, first H lanes belong to the fwd direction
        lane8h = jax.lax.broadcasted_iota(jnp.int32, (1, 8 * H), 1)
        fwd_mask = (lane8h % (2 * H)) < H                             # (1, 8H)

        h = jnp.zeros((B, H2), jnp.float32)                           # [h_f | h_b]
        c = jnp.zeros((B, H2), jnp.float32)

        # ---- 2) fused fwd+bwd recurrence (block-diag Whh), fully unrolled (T static)
        for t in range(T):
            tb = T - 1 - t
            g_t = gates_x[t * B:(t + 1) * B, :]                       # fwd gates @ time t
            g_tb = gates_x[tb * B:(tb + 1) * B, :]                    # bwd gates @ time tb
            pre = jnp.where(fwd_mask, g_t, g_tb)                      # (B, 8H) one vselect
            g = pre + jnp.dot(h, whh, preferred_element_type=jnp.float32)
            i_g = jax.nn.sigmoid(g[:, 0:H2])
            f_g = jax.nn.sigmoid(g[:, H2:2 * H2])
            gg = jnp.tanh(g[:, 2 * H2:3 * H2])
            o_g = jax.nn.sigmoid(g[:, 3 * H2:4 * H2])
            c = f_g * c + i_g * gg
            h = o_g * jnp.tanh(c)
            h_scr[t * B:(t + 1) * B, 0:H] = h[:, 0:H]                 # fwd half -> row t
            h_scr[tb * B:(tb + 1) * B, H:H2] = h[:, H:H2]             # bwd half -> row tb

        # ---- 3) dense layer: ONE (T*B,2H)@(2H,Kp) matmul, padded tags ~ -1e30
        emis = (jnp.dot(h_scr[...], wd_ref[...],
                        preferred_element_type=jnp.float32)
                + bd_ref[...])                                        # (T*B, Kp)

        # ---- 4) CRF Viterbi decode: tmp is only (B, Kn=8, Kp); tiny hoisted constants
        trans_b = trans_ref[...][None, :, :]                          # (1, Kn, Kp)
        prev_iota = jax.lax.broadcasted_iota(jnp.int32, (1, 1, Kp), 2)
        lane_iota = jax.lax.broadcasted_iota(jnp.int32, (1, Kp), 1)
        tag_iota = jax.lax.broadcasted_iota(jnp.int32, (B, Kn), 1)
        neg_tail = jnp.full((B, Kp - Kn), NEG, jnp.float32)

        score = start_ref[...] + emis[0:B, :]                         # (B, Kp)
        hist = [None] * T                                             # (B, Kn) backpointers
        for t in range(1, T):
            # tmp[b, next, prev] = score[b, prev] + trans[next, prev]
            tmp = score[:, None, :] + trans_b                         # (B, Kn, Kp)
            best = jnp.max(tmp, axis=-1)                              # (B, Kn)
            eq = tmp >= best[:, :, None]
            hist[t] = jnp.min(jnp.where(eq, prev_iota, Kp), axis=-1).astype(jnp.int32)
            # re-expand to lane-dense Kp (padded lanes stay very negative via emis pad)
            score = jnp.concatenate([best, neg_tail], axis=-1) + emis[t * B:(t + 1) * B, :]

        score = score + end_ref[...]
        m = jnp.max(score, axis=-1, keepdims=True)
        best_tag = jnp.min(jnp.where(score >= m, lane_iota, Kp),
                           axis=-1, keepdims=True).astype(jnp.int32)  # (B, 1)

        # backtrace -> accumulate all tags and store once, lane-dense (B, T)
        cols = [None] * T
        cols[T - 1] = best_tag
        for t in range(T - 2, -1, -1):
            onehot = tag_iota == best_tag                             # (B, Kn)
            best_tag = jnp.sum(jnp.where(onehot, hist[t + 1], 0),
                               axis=-1, keepdims=True).astype(jnp.int32)
            cols[t] = best_tag
        tags_ref[...] = jnp.concatenate(cols, axis=1)                 # (B, T)

    return kernel


# --------------------------------------------------------------------------- params

def build_params(key, vob_size, embedding_size, tag_size):
    """Parameters in torch orientation (weight_ih: (4H,E), weight_hh: (4H,H), wd: (K,2H))."""
    H = embedding_size // 2
    ks = jax.random.split(key, 9)

    def xavier(k, shape):                       # nn.init.xavier_normal_ on (out, in)
        fan_out, fan_in = shape
        std = (2.0 / (fan_in + fan_out)) ** 0.5
        return std * jax.random.normal(k, shape, jnp.float32)

    return dict(
        embedding=jax.random.normal(ks[0], (vob_size, embedding_size), jnp.float32),
        wih_f=xavier(ks[1], (4 * H, embedding_size)),
        whh_f=xavier(ks[2], (4 * H, H)),
        b_f=jnp.zeros((1, 4 * H), jnp.float32),
        wih_b=xavier(ks[3], (4 * H, embedding_size)),
        whh_b=xavier(ks[4], (4 * H, H)),
        b_b=jnp.zeros((1, 4 * H), jnp.float32),
        wd=xavier(ks[5], (tag_size, embedding_size)),
        bd=jnp.zeros((1, tag_size), jnp.float32),
        transitions=jax.random.uniform(ks[6], (tag_size, tag_size), jnp.float32, -0.1, 0.1),
        start=jax.random.uniform(ks[7], (1, tag_size), jnp.float32, -0.1, 0.1),
        end=jax.random.uniform(ks[8], (1, tag_size), jnp.float32, -0.1, 0.1),
    )


def prepare_inference_params(params, tag_size):
    """One-time transpose / interleave / block-diag / pad of weights (outside jit)."""
    H = params['whh_f'].shape[1]
    K = tag_size
    Kp = ((K + 127) // 128) * 128          # lane padding (prev / tag axis)
    Kn = ((K + 7) // 8) * 8                # sublane padding (next axis)

    wih_f_T = params['wih_f'].T            # (E, 4H), gate blocks [i f g o]
    wih_b_T = params['wih_b'].T
    whh_f_T = params['whh_f'].T            # (H, 4H)
    whh_b_T = params['whh_b'].T

    # gate-interleaved input projection: columns [i_f i_b | f_f f_b | g_f g_b | o_f o_b]
    wih_cat = jnp.concatenate(
        [jnp.concatenate([wih_f_T[:, g * H:(g + 1) * H],
                          wih_b_T[:, g * H:(g + 1) * H]], axis=1)
         for g in range(4)], axis=1)                                   # (E, 8H)
    b_cat = jnp.concatenate(
        [jnp.concatenate([params['b_f'][:, g * H:(g + 1) * H],
                          params['b_b'][:, g * H:(g + 1) * H]], axis=1)
         for g in range(4)], axis=1)                                   # (1, 8H)

    # block-diagonal recurrent weights: h = [h_f | h_b] of width 2H
    zeros_h = jnp.zeros((H, H), jnp.float32)
    whh_cat = jnp.concatenate(
        [jnp.concatenate(
            [jnp.concatenate([whh_f_T[:, g * H:(g + 1) * H], zeros_h], axis=1),
             jnp.concatenate([zeros_h, whh_b_T[:, g * H:(g + 1) * H]], axis=1)],
            axis=0)
         for g in range(4)], axis=1)                                   # (2H, 8H)

    # dense + CRF tables, tag axis lane-padded to Kp, next axis sublane-padded to Kn
    wd = params['wd']                                                  # (K, 2H)
    wd_cat = jnp.zeros((2 * H, Kp), jnp.float32).at[:, :K].set(wd.T)
    bd = jnp.full((1, Kp), NEG, jnp.float32).at[:, :K].set(params['bd'])
    trans_np = jnp.full((Kn, Kp), NEG, jnp.float32).at[:K, :K].set(params['transitions'].T)
    start = jnp.full((1, Kp), NEG, jnp.float32).at[:, :K].set(params['start'])
    end = jnp.full((1, Kp), NEG, jnp.float32).at[:, :K].set(params['end'])

    return dict(embedding=params['embedding'], wih_cat=wih_cat, b_cat=b_cat,
                whh_cat=whh_cat, wd_cat=wd_cat, bd=bd,
                trans_np=trans_np, start=start, end=end)


# --------------------------------------------------------------------------- forward

@jax.jit
def bilstm_crf_forward(input_x, prep):
    # embedding lookup (gather) in plain JAX
    emb = jnp.take(prep['embedding'], input_x, axis=0)                # (B, S, E)
    B, S, E = emb.shape
    # torch `.view(seq, batch, emb)` is a memory reinterpret; flatten in the wrapper
    # so the kernel never reshapes: row r = (time r//B, batch r%B).
    x_flat = emb.reshape(S * B, E)
    H2 = prep['whh_cat'].shape[0]

    vmem = pl.BlockSpec(memory_space=pltpu.MemorySpace.VMEM)
    tags_bs = pl.pallas_call(
        make_kernel(S, B),
        out_shape=jax.ShapeDtypeStruct((B, S), jnp.int32),
        in_specs=[vmem] * 9,
        out_specs=vmem,
        scratch_shapes=[pltpu.VMEM((S * B, H2), jnp.float32)],
    )(x_flat, prep['wih_cat'], prep['b_cat'], prep['whh_cat'],
      prep['wd_cat'], prep['bd'], prep['trans_np'], prep['start'], prep['end'])
    return tags_bs.T                                                  # (S, B) int32


# --------------------------------------------------------------------------- main

if __name__ == "__main__":
    max_seq_len, tag_size, vob_size, embedding_size = 8, 5, 50, 32
    LSTM_layer_num, dropout = 1, 0.0   # dropout is identity at inference
    B = 2

    key = jax.random.PRNGKey(0)
    k_param, k_x = jax.random.split(key)
    params = build_params(k_param, vob_size, embedding_size, tag_size)
    prep = prepare_inference_params(params, tag_size)
    input_x = jax.random.randint(k_x, (B, max_seq_len), 0, vob_size, dtype=jnp.int32)

    tags = bilstm_crf_forward(input_x, prep)
    jax.block_until_ready(tags)
    assert tags.shape == (max_seq_len, B) and tags.dtype == jnp.int32
    assert bool(jnp.all((tags >= 0) & (tags < tag_size)))
    print("KERNEL_OK")
</pallas_src>

<mosaic_0001>
module attributes {stable_mosaic.version = 11 : i64} {
  func.func @kernel(%arg0: memref<16x32xf32, #tpu.memory_space<vmem>>, %arg1: memref<32x128xf32, #tpu.memory_space<vmem>>, %arg2: memref<1x128xf32, #tpu.memory_space<vmem>>, %arg3: memref<32x128xf32, #tpu.memory_space<vmem>>, %arg4: memref<32x128xf32, #tpu.memory_space<vmem>>, %arg5: memref<1x128xf32, #tpu.memory_space<vmem>>, %arg6: memref<8x128xf32, #tpu.memory_space<vmem>>, %arg7: memref<1x128xf32, #tpu.memory_space<vmem>>, %arg8: memref<1x128xf32, #tpu.memory_space<vmem>>, %arg9: memref<2x8xi32, #tpu.memory_space<vmem>>, %arg10: memref<16x32xf32, #tpu.memory_space<vmem>>) attributes {dimension_semantics = [], scalar_prefetch = 0 : i64, scratch_operands = 1 : i64, tpu.core_type = #tpu.core_type<tc>} {
    %c0 = arith.constant 0 : index
    %c0_0 = arith.constant 0 : index
    %0 = vector.load %arg0[%c0, %c0_0] : memref<16x32xf32, #tpu.memory_space<vmem>>, vector<16x32xf32>
    %c0_1 = arith.constant 0 : index
    %c0_2 = arith.constant 0 : index
    %1 = vector.load %arg1[%c0_1, %c0_2] : memref<32x128xf32, #tpu.memory_space<vmem>>, vector<32x128xf32>
    %cst = arith.constant dense<0.000000e+00> : vector<16x128xf32>
    %2 = tpu.matmul %0, %1, %cst {dimension_numbers = #tpu.dot_dimension_numbers<[1], [0], [0], [1], [0, 0, 1, 1], [], []>} : vector<16x32xf32>, vector<32x128xf32>, vector<16x128xf32> -> vector<16x128xf32>
    %c0_3 = arith.constant 0 : index
    %c0_4 = arith.constant 0 : index
    %3 = vector.load %arg2[%c0_3, %c0_4] : memref<1x128xf32, #tpu.memory_space<vmem>>, vector<1x128xf32>
    %4 = vector.broadcast %3 : vector<1x128xf32> to vector<16x128xf32>
    %5 = arith.addf %2, %4 : vector<16x128xf32>
    %c0_5 = arith.constant 0 : index
    %c0_6 = arith.constant 0 : index
    %6 = vector.load %arg3[%c0_5, %c0_6] : memref<32x128xf32, #tpu.memory_space<vmem>>, vector<32x128xf32>
    %7 = tpu.iota {dimensions = array<i32: 1>} : vector<1x128xi32>
    %c32_i32 = arith.constant 32 : i32
    %c0_i32 = arith.constant 0 : i32
    %8 = arith.cmpi eq, %c32_i32, %c0_i32 : i32
    %c1_i32 = arith.constant 1 : i32
    %9 = arith.select %8, %c1_i32, %c32_i32 : i32
    %10 = vector.broadcast %9 : i32 to vector<1x128xi32>
    %11 = arith.remsi %7, %10 : vector<1x128xi32>
    %c0_i32_7 = arith.constant 0 : i32
    %12 = vector.broadcast %c0_i32_7 : i32 to vector<1x128xi32>
    %13 = arith.cmpi ne, %11, %12 : vector<1x128xi32>
    %c0_i32_8 = arith.constant 0 : i32
    %14 = vector.broadcast %c0_i32_8 : i32 to vector<1x128xi32>
    %15 = arith.cmpi slt, %11, %14 : vector<1x128xi32>
    %c0_i32_9 = arith.constant 0 : i32
    %16 = arith.cmpi slt, %9, %c0_i32_9 : i32
    %17 = vector.broadcast %16 : i1 to vector<1x128xi1>
    %18 = vector.broadcast %17 : vector<1x128xi1> to vector<1x128xi1>
    %19 = arith.xori %15, %18 : vector<1x128xi1>
    %20 = arith.andi %19, %13 : vector<1x128xi1>
    %21 = vector.broadcast %9 : i32 to vector<1x128xi32>
    %22 = arith.addi %11, %21 : vector<1x128xi32>
    %23 = arith.select %20, %22, %11 : vector<1x128xi1>, vector<1x128xi32>
    %c16_i32 = arith.constant 16 : i32
    %24 = vector.broadcast %c16_i32 : i32 to vector<1x128xi32>
    %25 = arith.cmpi slt, %23, %24 : vector<1x128xi32>
    %cst_10 = arith.constant 0.000000e+00 : f32
    %26 = vector.broadcast %cst_10 : f32 to vector<2x32xf32>
    %cst_11 = arith.constant 0.000000e+00 : f32
    %27 = vector.broadcast %cst_11 : f32 to vector<2x32xf32>
    %28 = vector.extract_strided_slice %5 {offsets = [0, 0], sizes = [2, 128], strides = [1, 1]} : vector<16x128xf32> to vector<2x128xf32>
    %29 = vector.extract_strided_slice %5 {offsets = [14, 0], sizes = [2, 128], strides = [1, 1]} : vector<16x128xf32> to vector<2x128xf32>
    %30 = vector.shape_cast %25 : vector<1x128xi1> to vector<1x128xi1>
    %31 = vector.broadcast %30 : vector<1x128xi1> to vector<2x128xi1>
    %32 = arith.select %31, %28, %29 : vector<2x128xi1>, vector<2x128xf32>
    %cst_12 = arith.constant dense<0.000000e+00> : vector<2x128xf32>
    %33 = tpu.matmul %26, %6, %cst_12 {dimension_numbers = #tpu.dot_dimension_numbers<[1], [0], [0], [1], [0, 0, 1, 1], [], []>} : vector<2x32xf32>, vector<32x128xf32>, vector<2x128xf32> -> vector<2x128xf32>
    %34 = arith.addf %32, %33 : vector<2x128xf32>
    %35 = vector.extract_strided_slice %34 {offsets = [0, 0], sizes = [2, 32], strides = [1, 1]} : vector<2x128xf32> to vector<2x32xf32>
    %36 = arith.negf %35 : vector<2x32xf32>
    %37 = math.exp %36 : vector<2x32xf32>
    %cst_13 = arith.constant 1.000000e+00 : f32
    %38 = vector.broadcast %cst_13 : f32 to vector<2x32xf32>
    %39 = arith.addf %38, %37 : vector<2x32xf32>
    %40 = arith.divf %38, %39 : vector<2x32xf32>
    %41 = vector.extract_strided_slice %34 {offsets = [0, 32], sizes = [2, 32], strides = [1, 1]} : vector<2x128xf32> to vector<2x32xf32>
    %42 = arith.negf %41 : vector<2x32xf32>
    %43 = math.exp %42 : vector<2x32xf32>
    %cst_14 = arith.constant 1.000000e+00 : f32
    %44 = vector.broadcast %cst_14 : f32 to vector<2x32xf32>
    %45 = arith.addf %44, %43 : vector<2x32xf32>
    %46 = arith.divf %44, %45 : vector<2x32xf32>
    %47 = vector.extract_strided_slice %34 {offsets = [0, 64], sizes = [2, 32], strides = [1, 1]} : vector<2x128xf32> to vector<2x32xf32>
    %48 = math.tanh %47 : vector<2x32xf32>
    %49 = vector.extract_strided_slice %34 {offsets = [0, 96], sizes = [2, 32], strides = [1, 1]} : vector<2x128xf32> to vector<2x32xf32>
    %50 = arith.negf %49 : vector<2x32xf32>
    %51 = math.exp %50 : vector<2x32xf32>
    %cst_15 = arith.constant 1.000000e+00 : f32
    %52 = vector.broadcast %cst_15 : f32 to vector<2x32xf32>
    %53 = arith.addf %52, %51 : vector<2x32xf32>
    %54 = arith.divf %52, %53 : vector<2x32xf32>
    %55 = arith.mulf %46, %27 : vector<2x32xf32>
    %56 = arith.mulf %40, %48 : vector<2x32xf32>
    %57 = arith.addf %55, %56 : vector<2x32xf32>
    %58 = math.tanh %57 : vector<2x32xf32>
    %59 = arith.mulf %54, %58 : vector<2x32xf32>
    %60 = vector.extract_strided_slice %59 {offsets = [0, 0], sizes = [2, 16], strides = [1, 1]} : vector<2x32xf32> to vector<2x16xf32>
    %c0_16 = arith.constant 0 : index
    %c0_17 = arith.constant 0 : index
    %61 = vector.load %arg10[%c0_16, %c0_17] : memref<16x32xf32, #tpu.memory_space<vmem>>, vector<2x16xf32>
    tpu.vector_store %arg10[%c0_16, %c0_17], %60 {strides = array<i32>} : memref<16x32xf32, #tpu.memory_space<vmem>>, vector<2x16xf32>,
    %62 = vector.extract_strided_slice %59 {offsets = [0, 16], sizes = [2, 16], strides = [1, 1]} : vector<2x32xf32> to vector<2x16xf32>
    %c14 = arith.constant 14 : index
    %c16 = arith.constant 16 : index
    %63 = vector.load %arg10[%c14, %c16] : memref<16x32xf32, #tpu.memory_space<vmem>>, vector<2x16xf32>
    tpu.vector_store %arg10[%c14, %c16], %62 {strides = array<i32>} : memref<16x32xf32, #tpu.memory_space<vmem>>, vector<2x16xf32>,
    %64 = vector.extract_strided_slice %5 {offsets = [2, 0], sizes = [2, 128], strides = [1, 1]} : vector<16x128xf32> to vector<2x128xf32>
    %65 = vector.extract_strided_slice %5 {offsets = [12, 0], sizes = [2, 128], strides = [1, 1]} : vector<16x128xf32> to vector<2x128xf32>
    %66 = vector.shape_cast %25 : vector<1x128xi1> to vector<1x128xi1>
    %67 = vector.broadcast %66 : vector<1x128xi1> to vector<2x128xi1>
    %68 = arith.select %67, %64, %65 : vector<2x128xi1>, vector<2x128xf32>
    %cst_18 = arith.constant dense<0.000000e+00> : vector<2x128xf32>
    %69 = tpu.matmul %59, %6, %cst_18 {dimension_numbers = #tpu.dot_dimension_numbers<[1], [0], [0], [1], [0, 0, 1, 1], [], []>} : vector<2x32xf32>, vector<32x128xf32>, vector<2x128xf32> -> vector<2x128xf32>
    %70 = arith.addf %68, %69 : vector<2x128xf32>
    %71 = vector.extract_strided_slice %70 {offsets = [0, 0], sizes = [2, 32], strides = [1, 1]} : vector<2x128xf32> to vector<2x32xf32>
    %72 = arith.negf %71 : vector<2x32xf32>
    %73 = math.exp %72 : vector<2x32xf32>
    %cst_19 = arith.constant 1.000000e+00 : f32
    %74 = vector.broadcast %cst_19 : f32 to vector<2x32xf32>
    %75 = arith.addf %74, %73 : vector<2x32xf32>
    %76 = arith.divf %74, %75 : vector<2x32xf32>
    %77 = vector.extract_strided_slice %70 {offsets = [0, 32], sizes = [2, 32], strides = [1, 1]} : vector<2x128xf32> to vector<2x32xf32>
    %78 = arith.negf %77 : vector<2x32xf32>
    %79 = math.exp %78 : vector<2x32xf32>
    %cst_20 = arith.constant 1.000000e+00 : f32
    %80 = vector.broadcast %cst_20 : f32 to vector<2x32xf32>
    %81 = arith.addf %80, %79 : vector<2x32xf32>
    %82 = arith.divf %80, %81 : vector<2x32xf32>
    %83 = vector.extract_strided_slice %70 {offsets = [0, 64], sizes = [2, 32], strides = [1, 1]} : vector<2x128xf32> to vector<2x32xf32>
    %84 = math.tanh %83 : vector<2x32xf32>
    %85 = vector.extract_strided_slice %70 {offsets = [0, 96], sizes = [2, 32], strides = [1, 1]} : vector<2x128xf32> to vector<2x32xf32>
    %86 = arith.negf %85 : vector<2x32xf32>
    %87 = math.exp %86 : vector<2x32xf32>
    %cst_21 = arith.constant 1.000000e+00 : f32
    %88 = vector.broadcast %cst_21 : f32 to vector<2x32xf32>
    %89 = arith.addf %88, %87 : vector<2x32xf32>
    %90 = arith.divf %88, %89 : vector<2x32xf32>
    %91 = arith.mulf %82, %57 : vector<2x32xf32>
    %92 = arith.mulf %76, %84 : vector<2x32xf32>
    %93 = arith.addf %91, %92 : vector<2x32xf32>
    %94 = math.tanh %93 : vector<2x32xf32>
    %95 = arith.mulf %90, %94 : vector<2x32xf32>
    %96 = vector.extract_strided_slice %95 {offsets = [0, 0], sizes = [2, 16], strides = [1, 1]} : vector<2x32xf32> to vector<2x16xf32>
    %c2 = arith.constant 2 : index
    %c0_22 = arith.constant 0 : index
    %97 = vector.load %arg10[%c2, %c0_22] : memref<16x32xf32, #tpu.memory_space<vmem>>, vector<2x16xf32>
    tpu.vector_store %arg10[%c2, %c0_22], %96 {strides = array<i32>} : memref<16x32xf32, #tpu.memory_space<vmem>>, vector<2x16xf32>,
    %98 = vector.extract_strided_slice %95 {offsets = [0, 16], sizes = [2, 16], strides = [1, 1]} : vector<2x32xf32> to vector<2x16xf32>
    %c12 = arith.constant 12 : index
    %c16_23 = arith.constant 16 : index
    %99 = vector.load %arg10[%c12, %c16_23] : memref<16x32xf32, #tpu.memory_space<vmem>>, vector<2x16xf32>
    tpu.vector_store %arg10[%c12, %c16_23], %98 {strides = array<i32>} : memref<16x32xf32, #tpu.memory_space<vmem>>, vector<2x16xf32>,
    %100 = vector.extract_strided_slice %5 {offsets = [4, 0], sizes = [2, 128], strides = [1, 1]} : vector<16x128xf32> to vector<2x128xf32>
    %101 = vector.extract_strided_slice %5 {offsets = [10, 0], sizes = [2, 128], strides = [1, 1]} : vector<16x128xf32> to vector<2x128xf32>
    %102 = vector.shape_cast %25 : vector<1x128xi1> to vector<1x128xi1>
    %103 = vector.broadcast %102 : vector<1x128xi1> to vector<2x128xi1>
    %104 = arith.select %103, %100, %101 : vector<2x128xi1>, vector<2x128xf32>
    %cst_24 = arith.constant dense<0.000000e+00> : vector<2x128xf32>
    %105 = tpu.matmul %95, %6, %cst_24 {dimension_numbers = #tpu.dot_dimension_numbers<[1], [0], [0], [1], [0, 0, 1, 1], [], []>} : vector<2x32xf32>, vector<32x128xf32>, vector<2x128xf32> -> vector<2x128xf32>
    %106 = arith.addf %104, %105 : vector<2x128xf32>
    %107 = vector.extract_strided_slice %106 {offsets = [0, 0], sizes = [2, 32], strides = [1, 1]} : vector<2x128xf32> to vector<2x32xf32>
    %108 = arith.negf %107 : vector<2x32xf32>
    %109 = math.exp %108 : vector<2x32xf32>
    %cst_25 = arith.constant 1.000000e+00 : f32
    %110 = vector.broadcast %cst_25 : f32 to vector<2x32xf32>
    %111 = arith.addf %110, %109 : vector<2x32xf32>
    %112 = arith.divf %110, %111 : vector<2x32xf32>
    %113 = vector.extract_strided_slice %106 {offsets = [0, 32], sizes = [2, 32], strides = [1, 1]} : vector<2x128xf32> to vector<2x32xf32>
    %114 = arith.negf %113 : vector<2x32xf32>
    %115 = math.exp %114 : vector<2x32xf32>
    %cst_26 = arith.constant 1.000000e+00 : f32
    %116 = vector.broadcast %cst_26 : f32 to vector<2x32xf32>
    %117 = arith.addf %116, %115 : vector<2x32xf32>
    %118 = arith.divf %116, %117 : vector<2x32xf32>
    %119 = vector.extract_strided_slice %106 {offsets = [0, 64], sizes = [2, 32], strides = [1, 1]} : vector<2x128xf32> to vector<2x32xf32>
    %120 = math.tanh %119 : vector<2x32xf32>
    %121 = vector.extract_strided_slice %106 {offsets = [0, 96], sizes = [2, 32], strides = [1, 1]} : vector<2x128xf32> to vector<2x32xf32>
    %122 = arith.negf %121 : vector<2x32xf32>
    %123 = math.exp %122 : vector<2x32xf32>
    %cst_27 = arith.constant 1.000000e+00 : f32
    %124 = vector.broadcast %cst_27 : f32 to vector<2x32xf32>
    %125 = arith.addf %124, %123 : vector<2x32xf32>
    %126 = arith.divf %124, %125 : vector<2x32xf32>
    %127 = arith.mulf %118, %93 : vector<2x32xf32>
    %128 = arith.mulf %112, %120 : vector<2x32xf32>
    %129 = arith.addf %127, %128 : vector<2x32xf32>
    %130 = math.tanh %129 : vector<2x32xf32>
    %131 = arith.mulf %126, %130 : vector<2x32xf32>
    %132 = vector.extract_strided_slice %131 {offsets = [0, 0], sizes = [2, 16], strides = [1, 1]} : vector<2x32xf32> to vector<2x16xf32>
    %c4 = arith.constant 4 : index
    %c0_28 = arith.constant 0 : index
    %133 = vector.load %arg10[%c4, %c0_28] : memref<16x32xf32, #tpu.memory_space<vmem>>, vector<2x16xf32>
    tpu.vector_store %arg10[%c4, %c0_28], %132 {strides = array<i32>} : memref<16x32xf32, #tpu.memory_space<vmem>>, vector<2x16xf32>,
    %134 = vector.extract_strided_slice %131 {offsets = [0, 16], sizes = [2, 16], strides = [1, 1]} : vector<2x32xf32> to vector<2x16xf32>
    %c10 = arith.constant 10 : index
    %c16_29 = arith.constant 16 : index
    %135 = vector.load %arg10[%c10, %c16_29] : memref<16x32xf32, #tpu.memory_space<vmem>>, vector<2x16xf32>
    tpu.vector_store %arg10[%c10, %c16_29], %134 {strides = array<i32>} : memref<16x32xf32, #tpu.memory_space<vmem>>, vector<2x16xf32>,
    %136 = vector.extract_strided_slice %5 {offsets = [6, 0], sizes = [2, 128], strides = [1, 1]} : vector<16x128xf32> to vector<2x128xf32>
    %137 = vector.extract_strided_slice %5 {offsets = [8, 0], sizes = [2, 128], strides = [1, 1]} : vector<16x128xf32> to vector<2x128xf32>
    %138 = vector.shape_cast %25 : vector<1x128xi1> to vector<1x128xi1>
    %139 = vector.broadcast %138 : vector<1x128xi1> to vector<2x128xi1>
    %140 = arith.select %139, %136, %137 : vector<2x128xi1>, vector<2x128xf32>
    %cst_30 = arith.constant dense<0.000000e+00> : vector<2x128xf32>
    %141 = tpu.matmul %131, %6, %cst_30 {dimension_numbers = #tpu.dot_dimension_numbers<[1], [0], [0], [1], [0, 0, 1, 1], [], []>} : vector<2x32xf32>, vector<32x128xf32>, vector<2x128xf32> -> vector<2x128xf32>
    %142 = arith.addf %140, %141 : vector<2x128xf32>
    %143 = vector.extract_strided_slice %142 {offsets = [0, 0], sizes = [2, 32], strides = [1, 1]} : vector<2x128xf32> to vector<2x32xf32>
    %144 = arith.negf %143 : vector<2x32xf32>
    %145 = math.exp %144 : vector<2x32xf32>
    %cst_31 = arith.constant 1.000000e+00 : f32
    %146 = vector.broadcast %cst_31 : f32 to vector<2x32xf32>
    %147 = arith.addf %146, %145 : vector<2x32xf32>
    %148 = arith.divf %146, %147 : vector<2x32xf32>
    %149 = vector.extract_strided_slice %142 {offsets = [0, 32], sizes = [2, 32], strides = [1, 1]} : vector<2x128xf32> to vector<2x32xf32>
    %150 = arith.negf %149 : vector<2x32xf32>
    %151 = math.exp %150 : vector<2x32xf32>
    %cst_32 = arith.constant 1.000000e+00 : f32
    %152 = vector.broadcast %cst_32 : f32 to vector<2x32xf32>
    %153 = arith.addf %152, %151 : vector<2x32xf32>
    %154 = arith.divf %152, %153 : vector<2x32xf32>
    %155 = vector.extract_strided_slice %142 {offsets = [0, 64], sizes = [2, 32], strides = [1, 1]} : vector<2x128xf32> to vector<2x32xf32>
    %156 = math.tanh %155 : vector<2x32xf32>
    %157 = vector.extract_strided_slice %142 {offsets = [0, 96], sizes = [2, 32], strides = [1, 1]} : vector<2x128xf32> to vector<2x32xf32>
    %158 = arith.negf %157 : vector<2x32xf32>
    %159 = math.exp %158 : vector<2x32xf32>
    %cst_33 = arith.constant 1.000000e+00 : f32
    %160 = vector.broadcast %cst_33 : f32 to vector<2x32xf32>
    %161 = arith.addf %160, %159 : vector<2x32xf32>
    %162 = arith.divf %160, %161 : vector<2x32xf32>
    %163 = arith.mulf %154, %129 : vector<2x32xf32>
    %164 = arith.mulf %148, %156 : vector<2x32xf32>
    %165 = arith.addf %163, %164 : vector<2x32xf32>
    %166 = math.tanh %165 : vector<2x32xf32>
    %167 = arith.mulf %162, %166 : vector<2x32xf32>
    %168 = vector.extract_strided_slice %167 {offsets = [0, 0], sizes = [2, 16], strides = [1, 1]} : vector<2x32xf32> to vector<2x16xf32>
    %c6 = arith.constant 6 : index
    %c0_34 = arith.constant 0 : index
    %169 = vector.load %arg10[%c6, %c0_34] : memref<16x32xf32, #tpu.memory_space<vmem>>, vector<2x16xf32>
    tpu.vector_store %arg10[%c6, %c0_34], %168 {strides = array<i32>} : memref<16x32xf32, #tpu.memory_space<vmem>>, vector<2x16xf32>,
    %170 = vector.extract_strided_slice %167 {offsets = [0, 16], sizes = [2, 16], strides = [1, 1]} : vector<2x32xf32> to vector<2x16xf32>
    %c8 = arith.constant 8 : index
    %c16_35 = arith.constant 16 : index
    %171 = vector.load %arg10[%c8, %c16_35] : memref<16x32xf32, #tpu.memory_space<vmem>>, vector<2x16xf32>
    tpu.vector_store %arg10[%c8, %c16_35], %170 {strides = array<i32>} : memref<16x32xf32, #tpu.memory_space<vmem>>, vector<2x16xf32>,
    %172 = vector.extract_strided_slice %5 {offsets = [8, 0], sizes = [2, 128], strides = [1, 1]} : vector<16x128xf32> to vector<2x128xf32>
    %173 = vector.extract_strided_slice %5 {offsets = [6, 0], sizes = [2, 128], strides = [1, 1]} : vector<16x128xf32> to vector<2x128xf32>
    %174 = vector.shape_cast %25 : vector<1x128xi1> to vector<1x128xi1>
    %175 = vector.broadcast %174 : vector<1x128xi1> to vector<2x128xi1>
    %176 = arith.select %175, %172, %173 : vector<2x128xi1>, vector<2x128xf32>
    %cst_36 = arith.constant dense<0.000000e+00> : vector<2x128xf32>
    %177 = tpu.matmul %167, %6, %cst_36 {dimension_numbers = #tpu.dot_dimension_numbers<[1], [0], [0], [1], [0, 0, 1, 1], [], []>} : vector<2x32xf32>, vector<32x128xf32>, vector<2x128xf32> -> vector<2x128xf32>
    %178 = arith.addf %176, %177 : vector<2x128xf32>
    %179 = vector.extract_strided_slice %178 {offsets = [0, 0], sizes = [2, 32], strides = [1, 1]} : vector<2x128xf32> to vector<2x32xf32>
    %180 = arith.negf %179 : vector<2x32xf32>
    %181 = math.exp %180 : vector<2x32xf32>
    %cst_37 = arith.constant 1.000000e+00 : f32
    %182 = vector.broadcast %cst_37 : f32 to vector<2x32xf32>
    %183 = arith.addf %182, %181 : vector<2x32xf32>
    %184 = arith.divf %182, %183 : vector<2x32xf32>
    %185 = vector.extract_strided_slice %178 {offsets = [0, 32], sizes = [2, 32], strides = [1, 1]} : vector<2x128xf32> to vector<2x32xf32>
    %186 = arith.negf %185 : vector<2x32xf32>
    %187 = math.exp %186 : vector<2x32xf32>
    %cst_38 = arith.constant 1.000000e+00 : f32
    %188 = vector.broadcast %cst_38 : f32 to vector<2x32xf32>
    %189 = arith.addf %188, %187 : vector<2x32xf32>
    %190 = arith.divf %188, %189 : vector<2x32xf32>
    %191 = vector.extract_strided_slice %178 {offsets = [0, 64], sizes = [2, 32], strides = [1, 1]} : vector<2x128xf32> to vector<2x32xf32>
    %192 = math.tanh %191 : vector<2x32xf32>
    %193 = vector.extract_strided_slice %178 {offsets = [0, 96], sizes = [2, 32], strides = [1, 1]} : vector<2x128xf32> to vector<2x32xf32>
    %194 = arith.negf %193 : vector<2x32xf32>
    %195 = math.exp %194 : vector<2x32xf32>
    %cst_39 = arith.constant 1.000000e+00 : f32
    %196 = vector.broadcast %cst_39 : f32 to vector<2x32xf32>
    %197 = arith.addf %196, %195 : vector<2x32xf32>
    %198 = arith.divf %196, %197 : vector<2x32xf32>
    %199 = arith.mulf %190, %165 : vector<2x32xf32>
    %200 = arith.mulf %184, %192 : vector<2x32xf32>
    %201 = arith.addf %199, %200 : vector<2x32xf32>
    %202 = math.tanh %201 : vector<2x32xf32>
    %203 = arith.mulf %198, %202 : vector<2x32xf32>
    %204 = vector.extract_strided_slice %203 {offsets = [0, 0], sizes = [2, 16], strides = [1, 1]} : vector<2x32xf32> to vector<2x16xf32>
    %c8_40 = arith.constant 8 : index
    %c0_41 = arith.constant 0 : index
    %205 = vector.load %arg10[%c8_40, %c0_41] : memref<16x32xf32, #tpu.memory_space<vmem>>, vector<2x16xf32>
    tpu.vector_store %arg10[%c8_40, %c0_41], %204 {strides = array<i32>} : memref<16x32xf32, #tpu.memory_space<vmem>>, vector<2x16xf32>,
    %206 = vector.extract_strided_slice %203 {offsets = [0, 16], sizes = [2, 16], strides = [1, 1]} : vector<2x32xf32> to vector<2x16xf32>
    %c6_42 = arith.constant 6 : index
    %c16_43 = arith.constant 16 : index
    %207 = vector.load %arg10[%c6_42, %c16_43] : memref<16x32xf32, #tpu.memory_space<vmem>>, vector<2x16xf32>
    tpu.vector_store %arg10[%c6_42, %c16_43], %206 {strides = array<i32>} : memref<16x32xf32, #tpu.memory_space<vmem>>, vector<2x16xf32>,
    %208 = vector.extract_strided_slice %5 {offsets = [10, 0], sizes = [2, 128], strides = [1, 1]} : vector<16x128xf32> to vector<2x128xf32>
    %209 = vector.extract_strided_slice %5 {offsets = [4, 0], sizes = [2, 128], strides = [1, 1]} : vector<16x128xf32> to vector<2x128xf32>
    %210 = vector.shape_cast %25 : vector<1x128xi1> to vector<1x128xi1>
    %211 = vector.broadcast %210 : vector<1x128xi1> to vector<2x128xi1>
    %212 = arith.select %211, %208, %209 : vector<2x128xi1>, vector<2x128xf32>
    %cst_44 = arith.constant dense<0.000000e+00> : vector<2x128xf32>
    %213 = tpu.matmul %203, %6, %cst_44 {dimension_numbers = #tpu.dot_dimension_numbers<[1], [0], [0], [1], [0, 0, 1, 1], [], []>} : vector<2x32xf32>, vector<32x128xf32>, vector<2x128xf32> -> vector<2x128xf32>
    %214 = arith.addf %212, %213 : vector<2x128xf32>
    %215 = vector.extract_strided_slice %214 {offsets = [0, 0], sizes = [2, 32], strides = [1, 1]} : vector<2x128xf32> to vector<2x32xf32>
    %216 = arith.negf %215 : vector<2x32xf32>
    %217 = math.exp %216 : vector<2x32xf32>
    %cst_45 = arith.constant 1.000000e+00 : f32
    %218 = vector.broadcast %cst_45 : f32 to vector<2x32xf32>
    %219 = arith.addf %218, %217 : vector<2x32xf32>
    %220 = arith.divf %218, %219 : vector<2x32xf32>
    %221 = vector.extract_strided_slice %214 {offsets = [0, 32], sizes = [2, 32], strides = [1, 1]} : vector<2x128xf32> to vector<2x32xf32>
    %222 = arith.negf %221 : vector<2x32xf32>
    %223 = math.exp %222 : vector<2x32xf32>
    %cst_46 = arith.constant 1.000000e+00 : f32
    %224 = vector.broadcast %cst_46 : f32 to vector<2x32xf32>
    %225 = arith.addf %224, %223 : vector<2x32xf32>
    %226 = arith.divf %224, %225 : vector<2x32xf32>
    %227 = vector.extract_strided_slice %214 {offsets = [0, 64], sizes = [2, 32], strides = [1, 1]} : vector<2x128xf32> to vector<2x32xf32>
    %228 = math.tanh %227 : vector<2x32xf32>
    %229 = vector.extract_strided_slice %214 {offsets = [0, 96], sizes = [2, 32], strides = [1, 1]} : vector<2x128xf32> to vector<2x32xf32>
    %230 = arith.negf %229 : vector<2x32xf32>
    %231 = math.exp %230 : vector<2x32xf32>
    %cst_47 = arith.constant 1.000000e+00 : f32
    %232 = vector.broadcast %cst_47 : f32 to vector<2x32xf32>
    %233 = arith.addf %232, %231 : vector<2x32xf32>
    %234 = arith.divf %232, %233 : vector<2x32xf32>
    %235 = arith.mulf %226, %201 : vector<2x32xf32>
    %236 = arith.mulf %220, %228 : vector<2x32xf32>
    %237 = arith.addf %235, %236 : vector<2x32xf32>
    %238 = math.tanh %237 : vector<2x32xf32>
    %239 = arith.mulf %234, %238 : vector<2x32xf32>
    %240 = vector.extract_strided_slice %239 {offsets = [0, 0], sizes = [2, 16], strides = [1, 1]} : vector<2x32xf32> to vector<2x16xf32>
    %c10_48 = arith.constant 10 : index
    %c0_49 = arith.constant 0 : index
    %241 = vector.load %arg10[%c10_48, %c0_49] : memref<16x32xf32, #tpu.memory_space<vmem>>, vector<2x16xf32>
    tpu.vector_store %arg10[%c10_48, %c0_49], %240 {strides = array<i32>} : memref<16x32xf32, #tpu.memory_space<vmem>>, vector<2x16xf32>,
    %242 = vector.extract_strided_slice %239 {offsets = [0, 16], sizes = [2, 16], strides = [1, 1]} : vector<2x32xf32> to vector<2x16xf32>
    %c4_50 = arith.constant 4 : index
    %c16_51 = arith.constant 16 : index
    %243 = vector.load %arg10[%c4_50, %c16_51] : memref<16x32xf32, #tpu.memory_space<vmem>>, vector<2x16xf32>
    tpu.vector_store %arg10[%c4_50, %c16_51], %242 {strides = array<i32>} : memref<16x32xf32, #tpu.memory_space<vmem>>, vector<2x16xf32>,
    %244 = vector.extract_strided_slice %5 {offsets = [12, 0], sizes = [2, 128], strides = [1, 1]} : vector<16x128xf32> to vector<2x128xf32>
    %245 = vector.extract_strided_slice %5 {offsets = [2, 0], sizes = [2, 128], strides = [1, 1]} : vector<16x128xf32> to vector<2x128xf32>
    %246 = vector.shape_cast %25 : vector<1x128xi1> to vector<1x128xi1>
    %247 = vector.broadcast %246 : vector<1x128xi1> to vector<2x128xi1>
    %248 = arith.select %247, %244, %245 : vector<2x128xi1>, vector<2x128xf32>
    %cst_52 = arith.constant dense<0.000000e+00> : vector<2x128xf32>
    %249 = tpu.matmul %239, %6, %cst_52 {dimension_numbers = #tpu.dot_dimension_numbers<[1], [0], [0], [1], [0, 0, 1, 1], [], []>} : vector<2x32xf32>, vector<32x128xf32>, vector<2x128xf32> -> vector<2x128xf32>
    %250 = arith.addf %248, %249 : vector<2x128xf32>
    %251 = vector.extract_strided_slice %250 {offsets = [0, 0], sizes = [2, 32], strides = [1, 1]} : vector<2x128xf32> to vector<2x32xf32>
    %252 = arith.negf %251 : vector<2x32xf32>
    %253 = math.exp %252 : vector<2x32xf32>
    %cst_53 = arith.constant 1.000000e+00 : f32
    %254 = vector.broadcast %cst_53 : f32 to vector<2x32xf32>
    %255 = arith.addf %254, %253 : vector<2x32xf32>
    %256 = arith.divf %254, %255 : vector<2x32xf32>
    %257 = vector.extract_strided_slice %250 {offsets = [0, 32], sizes = [2, 32], strides = [1, 1]} : vector<2x128xf32> to vector<2x32xf32>
    %258 = arith.negf %257 : vector<2x32xf32>
    %259 = math.exp %258 : vector<2x32xf32>
    %cst_54 = arith.constant 1.000000e+00 : f32
    %260 = vector.broadcast %cst_54 : f32 to vector<2x32xf32>
    %261 = arith.addf %260, %259 : vector<2x32xf32>
    %262 = arith.divf %260, %261 : vector<2x32xf32>
    %263 = vector.extract_strided_slice %250 {offsets = [0, 64], sizes = [2, 32], strides = [1, 1]} : vector<2x128xf32> to vector<2x32xf32>
    %264 = math.tanh %263 : vector<2x32xf32>
    %265 = vector.extract_strided_slice %250 {offsets = [0, 96], sizes = [2, 32], strides = [1, 1]} : vector<2x128xf32> to vector<2x32xf32>
    %266 = arith.negf %265 : vector<2x32xf32>
    %267 = math.exp %266 : vector<2x32xf32>
    %cst_55 = arith.constant 1.000000e+00 : f32
    %268 = vector.broadcast %cst_55 : f32 to vector<2x32xf32>
    %269 = arith.addf %268, %267 : vector<2x32xf32>
    %270 = arith.divf %268, %269 : vector<2x32xf32>
    %271 = arith.mulf %262, %237 : vector<2x32xf32>
    %272 = arith.mulf %256, %264 : vector<2x32xf32>
    %273 = arith.addf %271, %272 : vector<2x32xf32>
    %274 = math.tanh %273 : vector<2x32xf32>
    %275 = arith.mulf %270, %274 : vector<2x32xf32>
    %276 = vector.extract_strided_slice %275 {offsets = [0, 0], sizes = [2, 16], strides = [1, 1]} : vector<2x32xf32> to vector<2x16xf32>
    %c12_56 = arith.constant 12 : index
    %c0_57 = arith.constant 0 : index
    %277 = vector.load %arg10[%c12_56, %c0_57] : memref<16x32xf32, #tpu.memory_space<vmem>>, vector<2x16xf32>
    tpu.vector_store %arg10[%c12_56, %c0_57], %276 {strides = array<i32>} : memref<16x32xf32, #tpu.memory_space<vmem>>, vector<2x16xf32>,
    %278 = vector.extract_strided_slice %275 {offsets = [0, 16], sizes = [2, 16], strides = [1, 1]} : vector<2x32xf32> to vector<2x16xf32>
    %c2_58 = arith.constant 2 : index
    %c16_59 = arith.constant 16 : index
    %279 = vector.load %arg10[%c2_58, %c16_59] : memref<16x32xf32, #tpu.memory_space<vmem>>, vector<2x16xf32>
    tpu.vector_store %arg10[%c2_58, %c16_59], %278 {strides = array<i32>} : memref<16x32xf32, #tpu.memory_space<vmem>>, vector<2x16xf32>,
    %280 = vector.extract_strided_slice %5 {offsets = [14, 0], sizes = [2, 128], strides = [1, 1]} : vector<16x128xf32> to vector<2x128xf32>
    %281 = vector.extract_strided_slice %5 {offsets = [0, 0], sizes = [2, 128], strides = [1, 1]} : vector<16x128xf32> to vector<2x128xf32>
    %282 = vector.shape_cast %25 : vector<1x128xi1> to vector<1x128xi1>
    %283 = vector.broadcast %282 : vector<1x128xi1> to vector<2x128xi1>
    %284 = arith.select %283, %280, %281 : vector<2x128xi1>, vector<2x128xf32>
    %cst_60 = arith.constant dense<0.000000e+00> : vector<2x128xf32>
    %285 = tpu.matmul %275, %6, %cst_60 {dimension_numbers = #tpu.dot_dimension_numbers<[1], [0], [0], [1], [0, 0, 1, 1], [], []>} : vector<2x32xf32>, vector<32x128xf32>, vector<2x128xf32> -> vector<2x128xf32>
    %286 = arith.addf %284, %285 : vector<2x128xf32>
    %287 = vector.extract_strided_slice %286 {offsets = [0, 0], sizes = [2, 32], strides = [1, 1]} : vector<2x128xf32> to vector<2x32xf32>
    %288 = arith.negf %287 : vector<2x32xf32>
    %289 = math.exp %288 : vector<2x32xf32>
    %cst_61 = arith.constant 1.000000e+00 : f32
    %290 = vector.broadcast %cst_61 : f32 to vector<2x32xf32>
    %291 = arith.addf %290, %289 : vector<2x32xf32>
    %292 = arith.divf %290, %291 : vector<2x32xf32>
    %293 = vector.extract_strided_slice %286 {offsets = [0, 32], sizes = [2, 32], strides = [1, 1]} : vector<2x128xf32> to vector<2x32xf32>
    %294 = arith.negf %293 : vector<2x32xf32>
    %295 = math.exp %294 : vector<2x32xf32>
    %cst_62 = arith.constant 1.000000e+00 : f32
    %296 = vector.broadcast %cst_62 : f32 to vector<2x32xf32>
    %297 = arith.addf %296, %295 : vector<2x32xf32>
    %298 = arith.divf %296, %297 : vector<2x32xf32>
    %299 = vector.extract_strided_slice %286 {offsets = [0, 64], sizes = [2, 32], strides = [1, 1]} : vector<2x128xf32> to vector<2x32xf32>
    %300 = math.tanh %299 : vector<2x32xf32>
    %301 = vector.extract_strided_slice %286 {offsets = [0, 96], sizes = [2, 32], strides = [1, 1]} : vector<2x128xf32> to vector<2x32xf32>
    %302 = arith.negf %301 : vector<2x32xf32>
    %303 = math.exp %302 : vector<2x32xf32>
    %cst_63 = arith.constant 1.000000e+00 : f32
    %304 = vector.broadcast %cst_63 : f32 to vector<2x32xf32>
    %305 = arith.addf %304, %303 : vector<2x32xf32>
    %306 = arith.divf %304, %305 : vector<2x32xf32>
    %307 = arith.mulf %298, %273 : vector<2x32xf32>
    %308 = arith.mulf %292, %300 : vector<2x32xf32>
    %309 = arith.addf %307, %308 : vector<2x32xf32>
    %310 = math.tanh %309 : vector<2x32xf32>
    %311 = arith.mulf %306, %310 : vector<2x32xf32>
    %312 = vector.extract_strided_slice %311 {offsets = [0, 0], sizes = [2, 16], strides = [1, 1]} : vector<2x32xf32> to vector<2x16xf32>
    %c14_64 = arith.constant 14 : index
    %c0_65 = arith.constant 0 : index
    %313 = vector.load %arg10[%c14_64, %c0_65] : memref<16x32xf32, #tpu.memory_space<vmem>>, vector<2x16xf32>
    tpu.vector_store %arg10[%c14_64, %c0_65], %312 {strides = array<i32>} : memref<16x32xf32, #tpu.memory_space<vmem>>, vector<2x16xf32>,
    %314 = vector.extract_strided_slice %311 {offsets = [0, 16], sizes = [2, 16], strides = [1, 1]} : vector<2x32xf32> to vector<2x16xf32>
    %c0_66 = arith.constant 0 : index
    %c16_67 = arith.constant 16 : index
    %315 = vector.load %arg10[%c0_66, %c16_67] : memref<16x32xf32, #tpu.memory_space<vmem>>, vector<2x16xf32>
    tpu.vector_store %arg10[%c0_66, %c16_67], %314 {strides = array<i32>} : memref<16x32xf32, #tpu.memory_space<vmem>>, vector<2x16xf32>,
    %c0_68 = arith.constant 0 : index
    %c0_69 = arith.constant 0 : index
    %316 = vector.load %arg10[%c0_68, %c0_69] : memref<16x32xf32, #tpu.memory_space<vmem>>, vector<16x32xf32>
    %c0_70 = arith.constant 0 : index
    %c0_71 = arith.constant 0 : index
    %317 = vector.load %arg4[%c0_70, %c0_71] : memref<32x128xf32, #tpu.memory_space<vmem>>, vector<32x128xf32>
    %cst_72 = arith.constant dense<0.000000e+00> : vector<16x128xf32>
    %318 = tpu.matmul %316, %317, %cst_72 {dimension_numbers = #tpu.dot_dimension_numbers<[1], [0], [0], [1], [0, 0, 1, 1], [], []>} : vector<16x32xf32>, vector<32x128xf32>, vector<16x128xf32> -> vector<16x128xf32>
    %c0_73 = arith.constant 0 : index
    %c0_74 = arith.constant 0 : index
    %319 = vector.load %arg5[%c0_73, %c0_74] : memref<1x128xf32, #tpu.memory_space<vmem>>, vector<1x128xf32>
    %320 = vector.broadcast %319 : vector<1x128xf32> to vector<16x128xf32>
    %321 = arith.addf %318, %320 : vector<16x128xf32>
    %c0_75 = arith.constant 0 : index
    %c0_76 = arith.constant 0 : index
    %322 = vector.load %arg6[%c0_75, %c0_76] : memref<8x128xf32, #tpu.memory_space<vmem>>, vector<8x128xf32>
    %323 = vector.shape_cast %322 : vector<8x128xf32> to vector<1x8x128xf32>
    %324 = tpu.iota {dimensions = array<i32: 2>} : vector<1x1x128xi32>
    %325 = tpu.iota {dimensions = array<i32: 1>} : vector<1x128xi32>
    %326 = tpu.iota {dimensions = array<i32: 1>} : vector<2x8xi32>
    %cst_77 = arith.constant -1.000000e+30 : f32
    %327 = vector.broadcast %cst_77 : f32 to vector<2x120xf32>
    %c0_78 = arith.constant 0 : index
    %c0_79 = arith.constant 0 : index
    %328 = vector.load %arg7[%c0_78, %c0_79] : memref<1x128xf32, #tpu.memory_space<vmem>>, vector<1x128xf32>
    %329 = vector.extract_strided_slice %321 {offsets = [0, 0], sizes = [2, 128], strides = [1, 1]} : vector<16x128xf32> to vector<2x128xf32>
    %330 = vector.broadcast %328 : vector<1x128xf32> to vector<2x128xf32>
    %331 = arith.addf %330, %329 : vector<2x128xf32>
    %332 = vector.shape_cast %331 : vector<2x128xf32> to vector<2x1x128xf32>
    %333 = vector.broadcast %332 : vector<2x1x128xf32> to vector<2x8x128xf32>
    %334 = vector.broadcast %323 : vector<1x8x128xf32> to vector<2x8x128xf32>
    %335 = arith.addf %333, %334 : vector<2x8x128xf32>
    %cst_80 = arith.constant dense<0xFF800000> : vector<2x8xf32>
    %336 = vector.multi_reduction <maximumf>, %335, %cst_80 [2] : vector<2x8x128xf32> to vector<2x8xf32>
    %337 = vector.shape_cast %336 : vector<2x8xf32> to vector<2x8x1xf32>
    %338 = vector.broadcast %337 : vector<2x8x1xf32> to vector<2x8x128xf32>
    %339 = arith.cmpf oge, %335, %338 : vector<2x8x128xf32>
    %c128_i32 = arith.constant 128 : i32
    %340 = vector.shape_cast %324 : vector<1x1x128xi32> to vector<1x1x128xi32>
    %341 = vector.broadcast %340 : vector<1x1x128xi32> to vector<2x8x128xi32>
    %342 = vector.broadcast %c128_i32 : i32 to vector<2x8x128xi32>
    %343 = arith.select %339, %341, %342 : vector<2x8x128xi1>, vector<2x8x128xi32>
    %cst_81 = arith.constant dense<2147483647> : vector<2x8xi32>
    %344 = vector.multi_reduction <minsi>, %343, %cst_81 [2] : vector<2x8x128xi32> to vector<2x8xi32>
    %345 = tpu.concatenate %336, %327 in 1 : vector<2x8xf32>, vector<2x120xf32> -> vector<2x128xf32>
    %346 = vector.extract_strided_slice %321 {offsets = [2, 0], sizes = [2, 128], strides = [1, 1]} : vector<16x128xf32> to vector<2x128xf32>
    %347 = arith.addf %345, %346 : vector<2x128xf32>
    %348 = vector.shape_cast %347 : vector<2x128xf32> to vector<2x1x128xf32>
    %349 = vector.broadcast %348 : vector<2x1x128xf32> to vector<2x8x128xf32>
    %350 = vector.broadcast %323 : vector<1x8x128xf32> to vector<2x8x128xf32>
    %351 = arith.addf %349, %350 : vector<2x8x128xf32>
    %cst_82 = arith.constant dense<0xFF800000> : vector<2x8xf32>
    %352 = vector.multi_reduction <maximumf>, %351, %cst_82 [2] : vector<2x8x128xf32> to vector<2x8xf32>
    %353 = vector.shape_cast %352 : vector<2x8xf32> to vector<2x8x1xf32>
    %354 = vector.broadcast %353 : vector<2x8x1xf32> to vector<2x8x128xf32>
    %355 = arith.cmpf oge, %351, %354 : vector<2x8x128xf32>
    %c128_i32_83 = arith.constant 128 : i32
    %356 = vector.shape_cast %324 : vector<1x1x128xi32> to vector<1x1x128xi32>
    %357 = vector.broadcast %356 : vector<1x1x128xi32> to vector<2x8x128xi32>
    %358 = vector.broadcast %c128_i32_83 : i32 to vector<2x8x128xi32>
    %359 = arith.select %355, %357, %358 : vector<2x8x128xi1>, vector<2x8x128xi32>
    %cst_84 = arith.constant dense<2147483647> : vector<2x8xi32>
    %360 = vector.multi_reduction <minsi>, %359, %cst_84 [2] : vector<2x8x128xi32> to vector<2x8xi32>
    %361 = tpu.concatenate %352, %327 in 1 : vector<2x8xf32>, vector<2x120xf32> -> vector<2x128xf32>
    %362 = vector.extract_strided_slice %321 {offsets = [4, 0], sizes = [2, 128], strides = [1, 1]} : vector<16x128xf32> to vector<2x128xf32>
    %363 = arith.addf %361, %362 : vector<2x128xf32>
    %364 = vector.shape_cast %363 : vector<2x128xf32> to vector<2x1x128xf32>
    %365 = vector.broadcast %364 : vector<2x1x128xf32> to vector<2x8x128xf32>
    %366 = vector.broadcast %323 : vector<1x8x128xf32> to vector<2x8x128xf32>
    %367 = arith.addf %365, %366 : vector<2x8x128xf32>
    %cst_85 = arith.constant dense<0xFF800000> : vector<2x8xf32>
    %368 = vector.multi_reduction <maximumf>, %367, %cst_85 [2] : vector<2x8x128xf32> to vector<2x8xf32>
    %369 = vector.shape_cast %368 : vector<2x8xf32> to vector<2x8x1xf32>
    %370 = vector.broadcast %369 : vector<2x8x1xf32> to vector<2x8x128xf32>
    %371 = arith.cmpf oge, %367, %370 : vector<2x8x128xf32>
    %c128_i32_86 = arith.constant 128 : i32
    %372 = vector.shape_cast %324 : vector<1x1x128xi32> to vector<1x1x128xi32>
    %373 = vector.broadcast %372 : vector<1x1x128xi32> to vector<2x8x128xi32>
    %374 = vector.broadcast %c128_i32_86 : i32 to vector<2x8x128xi32>
    %375 = arith.select %371, %373, %374 : vector<2x8x128xi1>, vector<2x8x128xi32>
    %cst_87 = arith.constant dense<2147483647> : vector<2x8xi32>
    %376 = vector.multi_reduction <minsi>, %375, %cst_87 [2] : vector<2x8x128xi32> to vector<2x8xi32>
    %377 = tpu.concatenate %368, %327 in 1 : vector<2x8xf32>, vector<2x120xf32> -> vector<2x128xf32>
    %378 = vector.extract_strided_slice %321 {offsets = [6, 0], sizes = [2, 128], strides = [1, 1]} : vector<16x128xf32> to vector<2x128xf32>
    %379 = arith.addf %377, %378 : vector<2x128xf32>
    %380 = vector.shape_cast %379 : vector<2x128xf32> to vector<2x1x128xf32>
    %381 = vector.broadcast %380 : vector<2x1x128xf32> to vector<2x8x128xf32>
    %382 = vector.broadcast %323 : vector<1x8x128xf32> to vector<2x8x128xf32>
    %383 = arith.addf %381, %382 : vector<2x8x128xf32>
    %cst_88 = arith.constant dense<0xFF800000> : vector<2x8xf32>
    %384 = vector.multi_reduction <maximumf>, %383, %cst_88 [2] : vector<2x8x128xf32> to vector<2x8xf32>
    %385 = vector.shape_cast %384 : vector<2x8xf32> to vector<2x8x1xf32>
    %386 = vector.broadcast %385 : vector<2x8x1xf32> to vector<2x8x128xf32>
    %387 = arith.cmpf oge, %383, %386 : vector<2x8x128xf32>
    %c128_i32_89 = arith.constant 128 : i32
    %388 = vector.shape_cast %324 : vector<1x1x128xi32> to vector<1x1x128xi32>
    %389 = vector.broadcast %388 : vector<1x1x128xi32> to vector<2x8x128xi32>
    %390 = vector.broadcast %c128_i32_89 : i32 to vector<2x8x128xi32>
    %391 = arith.select %387, %389, %390 : vector<2x8x128xi1>, vector<2x8x128xi32>
    %cst_90 = arith.constant dense<2147483647> : vector<2x8xi32>
    %392 = vector.multi_reduction <minsi>, %391, %cst_90 [2] : vector<2x8x128xi32> to vector<2x8xi32>
    %393 = tpu.concatenate %384, %327 in 1 : vector<2x8xf32>, vector<2x120xf32> -> vector<2x128xf32>
    %394 = vector.extract_strided_slice %321 {offsets = [8, 0], sizes = [2, 128], strides = [1, 1]} : vector<16x128xf32> to vector<2x128xf32>
    %395 = arith.addf %393, %394 : vector<2x128xf32>
    %396 = vector.shape_cast %395 : vector<2x128xf32> to vector<2x1x128xf32>
    %397 = vector.broadcast %396 : vector<2x1x128xf32> to vector<2x8x128xf32>
    %398 = vector.broadcast %323 : vector<1x8x128xf32> to vector<2x8x128xf32>
    %399 = arith.addf %397, %398 : vector<2x8x128xf32>
    %cst_91 = arith.constant dense<0xFF800000> : vector<2x8xf32>
    %400 = vector.multi_reduction <maximumf>, %399, %cst_91 [2] : vector<2x8x128xf32> to vector<2x8xf32>
    %401 = vector.shape_cast %400 : vector<2x8xf32> to vector<2x8x1xf32>
    %402 = vector.broadcast %401 : vector<2x8x1xf32> to vector<2x8x128xf32>
    %403 = arith.cmpf oge, %399, %402 : vector<2x8x128xf32>
    %c128_i32_92 = arith.constant 128 : i32
    %404 = vector.shape_cast %324 : vector<1x1x128xi32> to vector<1x1x128xi32>
    %405 = vector.broadcast %404 : vector<1x1x128xi32> to vector<2x8x128xi32>
    %406 = vector.broadcast %c128_i32_92 : i32 to vector<2x8x128xi32>
    %407 = arith.select %403, %405, %406 : vector<2x8x128xi1>, vector<2x8x128xi32>
    %cst_93 = arith.constant dense<2147483647> : vector<2x8xi32>
    %408 = vector.multi_reduction <minsi>, %407, %cst_93 [2] : vector<2x8x128xi32> to vector<2x8xi32>
    %409 = tpu.concatenate %400, %327 in 1 : vector<2x8xf32>, vector<2x120xf32> -> vector<2x128xf32>
    %410 = vector.extract_strided_slice %321 {offsets = [10, 0], sizes = [2, 128], strides = [1, 1]} : vector<16x128xf32> to vector<2x128xf32>
    %411 = arith.addf %409, %410 : vector<2x128xf32>
    %412 = vector.shape_cast %411 : vector<2x128xf32> to vector<2x1x128xf32>
    %413 = vector.broadcast %412 : vector<2x1x128xf32> to vector<2x8x128xf32>
    %414 = vector.broadcast %323 : vector<1x8x128xf32> to vector<2x8x128xf32>
    %415 = arith.addf %413, %414 : vector<2x8x128xf32>
    %cst_94 = arith.constant dense<0xFF800000> : vector<2x8xf32>
    %416 = vector.multi_reduction <maximumf>, %415, %cst_94 [2] : vector<2x8x128xf32> to vector<2x8xf32>
    %417 = vector.shape_cast %416 : vector<2x8xf32> to vector<2x8x1xf32>
    %418 = vector.broadcast %417 : vector<2x8x1xf32> to vector<2x8x128xf32>
    %419 = arith.cmpf oge, %415, %418 : vector<2x8x128xf32>
    %c128_i32_95 = arith.constant 128 : i32
    %420 = vector.shape_cast %324 : vector<1x1x128xi32> to vector<1x1x128xi32>
    %421 = vector.broadcast %420 : vector<1x1x128xi32> to vector<2x8x128xi32>
    %422 = vector.broadcast %c128_i32_95 : i32 to vector<2x8x128xi32>
    %423 = arith.select %419, %421, %422 : vector<2x8x128xi1>, vector<2x8x128xi32>
    %cst_96 = arith.constant dense<2147483647> : vector<2x8xi32>
    %424 = vector.multi_reduction <minsi>, %423, %cst_96 [2] : vector<2x8x128xi32> to vector<2x8xi32>
    %425 = tpu.concatenate %416, %327 in 1 : vector<2x8xf32>, vector<2x120xf32> -> vector<2x128xf32>
    %426 = vector.extract_strided_slice %321 {offsets = [12, 0], sizes = [2, 128], strides = [1, 1]} : vector<16x128xf32> to vector<2x128xf32>
    %427 = arith.addf %425, %426 : vector<2x128xf32>
    %428 = vector.shape_cast %427 : vector<2x128xf32> to vector<2x1x128xf32>
    %429 = vector.broadcast %428 : vector<2x1x128xf32> to vector<2x8x128xf32>
    %430 = vector.broadcast %323 : vector<1x8x128xf32> to vector<2x8x128xf32>
    %431 = arith.addf %429, %430 : vector<2x8x128xf32>
    %cst_97 = arith.constant dense<0xFF800000> : vector<2x8xf32>
    %432 = vector.multi_reduction <maximumf>, %431, %cst_97 [2] : vector<2x8x128xf32> to vector<2x8xf32>
    %433 = vector.shape_cast %432 : vector<2x8xf32> to vector<2x8x1xf32>
    %434 = vector.broadcast %433 : vector<2x8x1xf32> to vector<2x8x128xf32>
    %435 = arith.cmpf oge, %431, %434 : vector<2x8x128xf32>
    %c128_i32_98 = arith.constant 128 : i32
    %436 = vector.shape_cast %324 : vector<1x1x128xi32> to vector<1x1x128xi32>
    %437 = vector.broadcast %436 : vector<1x1x128xi32> to vector<2x8x128xi32>
    %438 = vector.broadcast %c128_i32_98 : i32 to vector<2x8x128xi32>
    %439 = arith.select %435, %437, %438 : vector<2x8x128xi1>, vector<2x8x128xi32>
    %cst_99 = arith.constant dense<2147483647> : vector<2x8xi32>
    %440 = vector.multi_reduction <minsi>, %439, %cst_99 [2] : vector<2x8x128xi32> to vector<2x8xi32>
    %441 = tpu.concatenate %432, %327 in 1 : vector<2x8xf32>, vector<2x120xf32> -> vector<2x128xf32>
    %442 = vector.extract_strided_slice %321 {offsets = [14, 0], sizes = [2, 128], strides = [1, 1]} : vector<16x128xf32> to vector<2x128xf32>
    %443 = arith.addf %441, %442 : vector<2x128xf32>
    %c0_100 = arith.constant 0 : index
    %c0_101 = arith.constant 0 : index
    %444 = vector.load %arg8[%c0_100, %c0_101] : memref<1x128xf32, #tpu.memory_space<vmem>>, vector<1x128xf32>
    %445 = vector.broadcast %444 : vector<1x128xf32> to vector<2x128xf32>
    %446 = arith.addf %443, %445 : vector<2x128xf32>
    %cst_102 = arith.constant dense<0xFF800000> : vector<2xf32>
    %447 = vector.multi_reduction <maximumf>, %446, %cst_102 [1] : vector<2x128xf32> to vector<2xf32>
    %448 = vector.shape_cast %447 : vector<2xf32> to vector<2x1xf32>
    %449 = vector.broadcast %448 : vector<2x1xf32> to vector<2x128xf32>
    %450 = arith.cmpf oge, %446, %449 : vector<2x128xf32>
    %c128_i32_103 = arith.constant 128 : i32
    %451 = vector.shape_cast %325 : vector<1x128xi32> to vector<1x128xi32>
    %452 = vector.broadcast %451 : vector<1x128xi32> to vector<2x128xi32>
    %453 = vector.broadcast %c128_i32_103 : i32 to vector<2x128xi32>
    %454 = arith.select %450, %452, %453 : vector<2x128xi1>, vector<2x128xi32>
    %cst_104 = arith.constant dense<2147483647> : vector<2xi32>
    %455 = vector.multi_reduction <minsi>, %454, %cst_104 [1] : vector<2x128xi32> to vector<2xi32>
    %456 = vector.shape_cast %455 : vector<2xi32> to vector<2x1xi32>
    %457 = vector.broadcast %456 : vector<2x1xi32> to vector<2x8xi32>
    %458 = arith.cmpi eq, %326, %457 : vector<2x8xi32>
    %c0_i32_105 = arith.constant 0 : i32
    %459 = vector.broadcast %c0_i32_105 : i32 to vector<2x8xi32>
    %460 = arith.select %458, %440, %459 : vector<2x8xi1>, vector<2x8xi32>
    %cst_106 = arith.constant dense<0> : vector<2xi32>
    %461 = vector.multi_reduction <add>, %460, %cst_106 [1] : vector<2x8xi32> to vector<2xi32>
    %462 = vector.shape_cast %461 : vector<2xi32> to vector<2x1xi32>
    %463 = vector.broadcast %462 : vector<2x1xi32> to vector<2x8xi32>
    %464 = arith.cmpi eq, %326, %463 : vector<2x8xi32>
    %c0_i32_107 = arith.constant 0 : i32
    %465 = vector.broadcast %c0_i32_107 : i32 to vector<2x8xi32>
    %466 = arith.select %464, %424, %465 : vector<2x8xi1>, vector<2x8xi32>
    %cst_108 = arith.constant dense<0> : vector<2xi32>
    %467 = vector.multi_reduction <add>, %466, %cst_108 [1] : vector<2x8xi32> to vector<2xi32>
    %468 = vector.shape_cast %467 : vector<2xi32> to vector<2x1xi32>
    %469 = vector.broadcast %468 : vector<2x1xi32> to vector<2x8xi32>
    %470 = arith.cmpi eq, %326, %469 : vector<2x8xi32>
    %c0_i32_109 = arith.constant 0 : i32
    %471 = vector.broadcast %c0_i32_109 : i32 to vector<2x8xi32>
    %472 = arith.select %470, %408, %471 : vector<2x8xi1>, vector<2x8xi32>
    %cst_110 = arith.constant dense<0> : vector<2xi32>
    %473 = vector.multi_reduction <add>, %472, %cst_110 [1] : vector<2x8xi32> to vector<2xi32>
    %474 = vector.shape_cast %473 : vector<2xi32> to vector<2x1xi32>
    %475 = vector.broadcast %474 : vector<2x1xi32> to vector<2x8xi32>
    %476 = arith.cmpi eq, %326, %475 : vector<2x8xi32>
    %c0_i32_111 = arith.constant 0 : i32
    %477 = vector.broadcast %c0_i32_111 : i32 to vector<2x8xi32>
    %478 = arith.select %476, %392, %477 : vector<2x8xi1>, vector<2x8xi32>
    %cst_112 = arith.constant dense<0> : vector<2xi32>
    %479 = vector.multi_reduction <add>, %478, %cst_112 [1] : vector<2x8xi32> to vector<2xi32>
    %480 = vector.shape_cast %479 : vector<2xi32> to vector<2x1xi32>
    %481 = vector.broadcast %480 : vector<2x1xi32> to vector<2x8xi32>
    %482 = arith.cmpi eq, %326, %481 : vector<2x8xi32>
    %c0_i32_113 = arith.constant 0 : i32
    %483 = vector.broadcast %c0_i32_113 : i32 to vector<2x8xi32>
    %484 = arith.select %482, %376, %483 : vector<2x8xi1>, vector<2x8xi32>
    %cst_114 = arith.constant dense<0> : vector<2xi32>
    %485 = vector.multi_reduction <add>, %484, %cst_114 [1] : vector<2x8xi32> to vector<2xi32>
    %486 = vector.shape_cast %485 : vector<2xi32> to vector<2x1xi32>
    %487 = vector.broadcast %486 : vector<2x1xi32> to vector<2x8xi32>
    %488 = arith.cmpi eq, %326, %487 : vector<2x8xi32>
    %c0_i32_115 = arith.constant 0 : i32
    %489 = vector.broadcast %c0_i32_115 : i32 to vector<2x8xi32>
    %490 = arith.select %488, %360, %489 : vector<2x8xi1>, vector<2x8xi32>
    %cst_116 = arith.constant dense<0> : vector<2xi32>
    %491 = vector.multi_reduction <add>, %490, %cst_116 [1] : vector<2x8xi32> to vector<2xi32>
    %492 = vector.shape_cast %491 : vector<2xi32> to vector<2x1xi32>
    %493 = vector.broadcast %492 : vector<2x1xi32> to vector<2x8xi32>
    %494 = arith.cmpi eq, %326, %493 : vector<2x8xi32>
    %c0_i32_117 = arith.constant 0 : i32
    %495 = vector.broadcast %c0_i32_117 : i32 to vector<2x8xi32>
    %496 = arith.select %494, %344, %495 : vector<2x8xi1>, vector<2x8xi32>
    %cst_118 = arith.constant dense<0> : vector<2xi32>
    %497 = vector.multi_reduction <add>, %496, %cst_118 [1] : vector<2x8xi32> to vector<2xi32>
    %498 = vector.shape_cast %497 : vector<2xi32> to vector<2x1xi32>
    %499 = tpu.concatenate %498, %492, %486, %480, %474, %468, %462, %456 in 1 : vector<2x1xi32>, vector<2x1xi32>, vector<2x1xi32>, vector<2x1xi32>, vector<2x1xi32>, vector<2x1xi32>, vector<2x1xi32>, vector<2x1xi32> -> vector<2x8xi32>
    %c0_119 = arith.constant 0 : index
    %c0_120 = arith.constant 0 : index
    %500 = vector.load %arg9[%c0_119, %c0_120] : memref<2x8xi32, #tpu.memory_space<vmem>>, vector<2x8xi32>
    tpu.vector_store %arg9[%c0_119, %c0_120], %499 {strides = array<i32>} : memref<2x8xi32, #tpu.memory_space<vmem>>, vector<2x8xi32>,
    return
  }
}

</mosaic_0001>

<bundles_post_ra>
// kernel: bilstm_crf_forward.1
= control target key start
LH: loop header
LB: loop body
LE: loop exit
PB: predicated region body
PF: predicated region fallthrough
CT: control target
= control target key end

     0   :  { %vm43_vm0 = vcmask 261120   ;;  %s1876_s0 = inlined_call_operand.vmem [shape: f32[16,32], index: 0, kind: input, shape index: {}]   ;;  %s1877_s1 = inlined_call_operand.vmem [shape: f32[32,128], index: 1, kind: input, shape index: {}]   ;;  %s1878_s2 = inlined_call_operand.vmem [shape: f32[1,128], index: 2, kind: input, shape index: {}]   ;;  %s1879_s3 = inlined_call_operand.vmem [shape: f32[32,128], index: 3, kind: input, shape index: {}]   ;;  %s1880_s4 = inlined_call_operand.vmem [shape: f32[32,128], index: 4, kind: input, shape index: {}]   ;;  %s1881_s5 = inlined_call_operand.vmem [shape: f32[1,128], index: 5, kind: input, shape index: {}]   ;;  %s1882_s6 = inlined_call_operand.vmem [shape: f32[8,128], index: 6, kind: input, shape index: {}]   ;;  %s1883_s7 = inlined_call_operand.vmem [shape: f32[1,128], index: 7, kind: input, shape index: {}]   ;;  %s1884_s8 = inlined_call_operand.vmem [shape: f32[1,128], index: 8, kind: input, shape index: {}]   ;;  %s1885_s9 = inlined_call_operand.hbm [shape: s32[2,8], index: 9, kind: output, shape index: {}]  }
   0x1   :  { %v38_v0 = vld [vmem:[%s1877_s1 + $0x18] sm:$0xff]  ;;  %v37_v1 = vld [vmem:[%s1877_s1 + $0x10] sm:$0xff]  ;;  %v36_v3 = vld [vmem:[%s1877_s1 + $0x8] sm:$0xff] }
   0x2   :  { %62 = vmatpush.msra.mxu0 %v38_v0  ;;  %v1488_v2 = vld [vmem:[%s1879_s3 + $0x18] sm:$0xff]  ;;  %v1497_v4 = vld [vmem:[%s1879_s3 + $0x10] sm:$0xff]  ;;  %v35_v5 = vld [vmem:[%s1877_s1] sm:$0xff] }
   0x3   :  { %113 = vmatpush.msra.mxu1 %v1488_v2  ;;  %184 = vmatpush.msra.mxu3 %v1488_v2  ;;  %v1506_v6 = vld [vmem:[%s1879_s3 + $0x8] sm:$0xff]  ;;  %v33_v7 = vld [vmem:[%s1876_s0] sm:$0xff] }
   0x4   :  { %63 = vmatpush.msra.mxu0 %v37_v1  ;;  %419 = vmatpush.msra.mxu2 %v1488_v2  ;;  %v1517_v8 = vld [vmem:[%s1879_s3] sm:$0xff] }
   0x5   :  { %114 = vmatpush.msra.mxu1 %v1497_v4  ;;  %185 = vmatpush.msra.mxu3 %v1497_v4 }
   0x6   :  { %64 = vmatpush.msra.mxu0 %v36_v3  ;;  %420 = vmatpush.msra.mxu2 %v1497_v4 }
   0x7   :  { %14 = vsyncpa [#allocation4], 0  ;;  %115 = vmatpush.msra.mxu1 %v1506_v6  ;;  %186 = vmatpush.msra.mxu3 %v1506_v6  ;;  %v1425_v9 = vmov 0.0   ;;  %v34_v10 = vld [vmem:[%s1876_s0 + $0x8] sm:$0xff]  ;;  %v77_v11 = vlaneseq  ;;  %v1331_v14 = vld [vmem:[%s1878_s2] ss:$0 sm:$0xff] }
   0x8   :  { %65 = vmatpush.msra.mxu0 %v35_v5  ;;  %421 = vmatpush.msra.mxu2 %v1506_v6  ;;  %s1426_s2 = smov 64   ;;  %s1427_s28 = smov 32   ;;  %vm163_vm6 = vcmask 123904   ;;  %vm165_vm7 = vcmask 255104  }
   0x9   :  { %1308 = vmatmul.msk.f32.vlgmr.msra.gmra.mxu0 %vm43_vm0, %v33_v7  ;;  %116 = vmatpush.msra.mxu1 %v1517_v8  ;;  %v1547_v13 = vand.u32 127, %v77_v11  ;;  %s1299_s23 = sshll.u32 %s1885_s9, 4  ;;  %s1300_s23 = int_to_ptr.hbm [resolvable:$true] %s1299_s23 }
   0xa   :  { %117 = vmatmul.f32.vlgmr.msra.gmra.mxu1 %v1425_v9  ;;  %187 = vmatpush.msra.mxu3 %v1517_v8 }
   0xb   :  { %338 = vmatpush.msrb.mxu1 %v1488_v2  ;;  %422 = vmatpush.msra.mxu2 %v1517_v8  ;;  %v83_v15 = vand.u32 31, %v1547_v13 }
   0xc   :  { %261 = vmatpush.msrb.mxu3 %v1488_v2  ;;  %566 = vmatpush.msrb.mxu0 %v1488_v2 }
   0xd   :  { %339 = vmatpush.msrb.mxu1 %v1497_v4  ;;  %vm91_vm1 = vcmp.lt.s32.totalorder %v83_v15, 16 }
   0xe   :  { %262 = vmatpush.msrb.mxu3 %v1497_v4  ;;  %567 = vmatpush.msrb.mxu0 %v1497_v4 }
   0xf   :  { %340 = vmatpush.msrb.mxu1 %v1506_v6 }
  0x10   :  { %263 = vmatpush.msrb.mxu3 %v1506_v6  ;;  %568 = vmatpush.msrb.mxu0 %v1506_v6 }
  0x11   :  { %1309 = vmatmul.msk.f32.gmra.mxu0 %vm43_vm0, %v34_v10  ;;  %341 = vmatpush.msrb.mxu1 %v1517_v8 }
  0x12   :  { %264 = vmatpush.msrb.mxu3 %v1517_v8  ;;  %569 = vmatpush.msrb.mxu0 %v1517_v8 }
  0x13   :  { %641 = vmatpush.msra.mxu1 %v1488_v2 }
  0x15   :  { %642 = vmatpush.msra.mxu1 %v1497_v4 }
  0x17   :  { %643 = vmatpush.msra.mxu1 %v1506_v6 }
  0x19   :  { %644 = vmatpush.msra.mxu1 %v1517_v8 }
  0x86   :  { %v67_v12 = vpop.f32.mrf.mxu0 }
  0x87   :  { %v68_v16 = vadd.f32 %v1331_v14, %v67_v12  ;;  %v118_v22 = vpop.f32.mrf.mxu1 }
  0x89   :  { %v399_v19 = vrot.slane %v68_v16, 6  ;;  %v474_v20 = vrot.slane %v68_v16, 2 }
  0x8e   :  { %v70_v17 = vpop.f32.mrf.mxu0 }
  0x8f   :  { %v71_v18 = vadd.f32 %v1331_v14, %v70_v17 }
  0x91   :  { %v95_v21 = vrot.slane %v71_v18, 6  ;;  %v167_v23 = vrot.slane %v71_v18, 2  ;;  %v1553_v24 = vsel %vm91_vm1, %v71_v18, %v399_v19  ;;  %v1555_v25 = vsel %vm91_vm1, %v71_v18, %v474_v20 }
  0x93   :  { %v1557_v26 = vsel %vm91_vm1, %v68_v16, %v95_v21  ;;  %v1559_v27 = vsel %vm91_vm1, %v68_v16, %v167_v23 }
  0x94   :  { %v121_v28 = vadd.f32 %v118_v22, %v1557_v26 }
  0x96   :  { %1335 = vtanh.f32 %v121_v28  ;;  %v1310_v30 = vmul.f32 -1.442695, %v121_v28 }
  0x98   :  { %1337 = vpow2.f32 %v1310_v30 }
  0x9c   :  { %v1336_v29 = vpop.eup %1335 }
  0x9d   :  { %144 = vrot.lane.b32.xlu0 %v1336_v29, %s1426_s2 }
  0x9e   :  { %v1338_v31 = vpop.eup %1337 }
  0x9f   :  { %v125_v32 = vadd.f32 1.0, %v1338_v31 }
  0xa1   :  { %1339 = vrcp.f32 %v125_v32  ;;  %v137_v38 = vand.u32 2147483648, %v125_v32  ;;  %vm131_vm3 = vweird.f32 %v125_v32  ;;  %v135_v39 = vand.u32 2147483647, %v125_v32 }
  0xa3   :  { %v138_v41 = vor.u32 1.1754944e-38, %v137_v38  ;;  %vm136_vm5 = vcmp.eq.f32.partialorder %v135_v39, 8.507059e+37 }
  0xa7   :  { %v1340_v33 = vpop.eup %1339 }
  0xa8   :  { %v127_v34 = vmul.f32 %v1340_v33, %v125_v32  ;;  %vm132_vm2 = vweird.f32 %v1340_v33 }
  0xa9   :  { %vm133_vm4 = vmor %vm131_vm3, %vm132_vm2 }
  0xaa   :  { %v128_v35 = vsub.f32 1.0, %v127_v34 }
  0xac   :  { %v129_v36 = vmul.f32 %v1340_v33, %v128_v35 }
  0xae   :  { %v130_v37 = vadd.f32 %v1340_v33, %v129_v36 }
  0xb0   :  { %v134_v40 = vsel %vm133_vm4, %v1340_v33, %v130_v37 }
  0xb1   :  { %v139_v43 = vsel %vm136_vm5, %v138_v41, %v134_v40 }
  0xb2   :  { %v142_v45 = vmul.f32 0.0, %v139_v43 }
 0x10f   :  { %v145_v42 = vpop.permute.xlu0 %144 }
 0x110   :  { %v147_v44 = vmul.f32 %v145_v42, %v139_v43 }
 0x112   :  { %149 = vrot.lane.b32.xlu0 %v147_v44, %s1427_s28 }
 0x184   :  { %v150_v46 = vpop.permute.xlu0 %149 }
 0x185   :  { %v152_v47 = vadd.f32 %v150_v46, %v142_v45 }
 0x187   :  { %1341 = vtanh.f32 %v152_v47  ;;  %v217_v7 = vrot.slane %v152_v47, 6 }
 0x18d   :  { %v1342_v48 = vpop.eup %1341 }
 0x18e   :  { %155 = vrot.lane.b32.xlu1 %v1342_v48, %s1426_s2 }
 0x200   :  { %v156_v49 = vpop.permute.xlu1 %155 }
 0x201   :  { %v158_v50 = vmul.f32 %v156_v49, %v139_v43 }
 0x203   :  { %160 = vrot.lane.b32.xlu1 %v158_v50, %s1427_s28 }
 0x275   :  { %v161_v51 = vpop.permute.xlu1 %160 }
 0x276   :  { %164 = vst.msk [vmem:[#allocation2] sm:$0x3] %vm163_vm6, %v161_v51  ;;  %1311 = vmatmul.msk.f32.vlgmr.msra.gmra.mxu3 %vm43_vm0, %v161_v51 }
 0x277   :  { %166 = vst.msk [vmem:[#allocation2 + $0xe] sm:$0x3] %vm165_vm7, %v161_v51  ;;  %491 = vmatpush.msra.mxu3 %v1488_v2 }
 0x279   :  { %492 = vmatpush.msra.mxu3 %v1497_v4 }
 0x27b   :  { %493 = vmatpush.msra.mxu3 %v1506_v6 }
 0x27d   :  { %494 = vmatpush.msra.mxu3 %v1517_v8 }
 0x2f9   :  { %v189_v52 = vpop.f32.mrf.mxu3 }
 0x2fa   :  { %v193_v53 = vrot.slane %v189_v52, 6 }
 0x2fc   :  { %v195_v54 = vadd.f32 %v193_v53, %v1559_v27 }
 0x2fe   :  { %1343 = vtanh.f32 %v195_v54  ;;  %v1312_v56 = vmul.f32 -1.442695, %v195_v54 }
 0x300   :  { %1345 = vpow2.f32 %v1312_v56 }
 0x304   :  { %v1344_v55 = vpop.eup %1343 }
 0x305   :  { %221 = vrot.lane.b32.xlu2 %v1344_v55, %s1426_s2 }
 0x306   :  { %v1346_v57 = vpop.eup %1345 }
 0x307   :  { %v199_v58 = vadd.f32 1.0, %v1346_v57 }
 0x309   :  { %1347 = vrcp.f32 %v199_v58  ;;  %v211_v0 = vand.u32 2147483648, %v199_v58  ;;  %vm205_vm9 = vweird.f32 %v199_v58  ;;  %v209_v1 = vand.u32 2147483647, %v199_v58 }
 0x30b   :  { %v212_v3 = vor.u32 1.1754944e-38, %v211_v0  ;;  %vm210_vm11 = vcmp.eq.f32.partialorder %v209_v1, 8.507059e+37 }
 0x30f   :  { %v1348_v59 = vpop.eup %1347 }
 0x310   :  { %v201_v60 = vmul.f32 %v1348_v59, %v199_v58  ;;  %vm206_vm8 = vweird.f32 %v1348_v59 }
 0x311   :  { %vm207_vm10 = vmor %vm205_vm9, %vm206_vm8 }
 0x312   :  { %v202_v61 = vsub.f32 1.0, %v201_v60 }
 0x314   :  { %v203_v62 = vmul.f32 %v1348_v59, %v202_v61 }
 0x316   :  { %v204_v63 = vadd.f32 %v1348_v59, %v203_v62 }
 0x318   :  { %v208_v2 = vsel %vm207_vm10, %v1348_v59, %v204_v63 }
 0x319   :  { %v213_v5 = vsel %vm210_vm11, %v212_v3, %v208_v2 }
 0x31a   :  { %v219_v8 = vmul.f32 %v217_v7, %v213_v5 }
 0x35f   :  { %v222_v4 = vpop.permute.xlu2 %221 }
 0x360   :  { %v224_v6 = vmul.f32 %v222_v4, %v213_v5 }
 0x362   :  { %226 = vrot.lane.b32.xlu2 %v224_v6, %s1427_s28 }
 0x3bc   :  { %v227_v9 = vpop.permute.xlu2 %226 }
 0x3bd   :  { %v229_v10 = vadd.f32 %v227_v9, %v219_v8 }
 0x3bf   :  { %1349 = vtanh.f32 %v229_v10  ;;  %v294_v39 = vrot.slane %v229_v10, 6 }
 0x3c5   :  { %v1350_v11 = vpop.eup %1349 }
 0x3c6   :  { %232 = vrot.lane.b32.xlu0 %v1350_v11, %s1426_s2 }
 0x438   :  { %v233_v12 = vpop.permute.xlu0 %232 }
 0x439   :  { %v1577_v14 = vmul.f32 %v233_v12, %v213_v5 }
 0x43b   :  { %v244_v15 = vrot.slane %v1577_v14, 2 }
 0x43d   :  { %245 = vrot.lane.b32.xlu1 %v244_v15, %s1427_s28 }
 0x4af   :  { %v246_v16 = vpop.permute.xlu1 %245 }
 0x4b0   :  { %1313 = vmatmul.msk.f32.vlgmr.msrb.gmra.mxu3 %vm43_vm0, %v246_v16 }
 0x533   :  { %v266_v17 = vpop.f32.mrf.mxu3 }
 0x534   :  { %v270_v18 = vrot.slane %v266_v17, 4 }
 0x536   :  { %v272_v19 = vadd.f32 %v270_v18, %v1557_v26 }
 0x538   :  { %1351 = vtanh.f32 %v272_v19  ;;  %v1314_v21 = vmul.f32 -1.442695, %v272_v19 }
 0x53a   :  { %1353 = vpow2.f32 %v1314_v21 }
 0x53e   :  { %v1352_v20 = vpop.eup %1351 }
 0x53f   :  { %298 = vrot.lane.b32.xlu2 %v1352_v20, %s1426_s2 }
 0x540   :  { %v1354_v22 = vpop.eup %1353 }
 0x541   :  { %v276_v23 = vadd.f32 1.0, %v1354_v22 }
 0x543   :  { %1355 = vrcp.f32 %v276_v23  ;;  %v288_v33 = vand.u32 2147483648, %v276_v23  ;;  %vm282_vm13 = vweird.f32 %v276_v23  ;;  %v286_v34 = vand.u32 2147483647, %v276_v23 }
 0x545   :  { %v289_v35 = vor.u32 1.1754944e-38, %v288_v33  ;;  %vm287_vm15 = vcmp.eq.f32.partialorder %v286_v34, 8.507059e+37 }
 0x549   :  { %v1356_v28 = vpop.eup %1355 }
 0x54a   :  { %v278_v29 = vmul.f32 %v1356_v28, %v276_v23  ;;  %vm283_vm12 = vweird.f32 %v1356_v28 }
 0x54b   :  { %vm284_vm14 = vmor %vm282_vm13, %vm283_vm12 }
 0x54c   :  { %v279_v30 = vsub.f32 1.0, %v278_v29 }
 0x54e   :  { %v280_v31 = vmul.f32 %v1356_v28, %v279_v30 }
 0x550   :  { %v281_v32 = vadd.f32 %v1356_v28, %v280_v31 }
 0x552   :  { %v285_v26 = vsel %vm284_vm14, %v1356_v28, %v281_v32 }
 0x553   :  { %v290_v37 = vsel %vm287_vm15, %v289_v35, %v285_v26 }
 0x554   :  { %v296_v40 = vmul.f32 %v294_v39, %v290_v37 }
 0x599   :  { %v299_v36 = vpop.permute.xlu2 %298 }
 0x59a   :  { %v301_v38 = vmul.f32 %v299_v36, %v290_v37 }
 0x59c   :  { %303 = vrot.lane.b32.xlu0 %v301_v38, %s1427_s28 }
 0x60e   :  { %v304_v41 = vpop.permute.xlu0 %303 }
 0x60f   :  { %v306_v42 = vadd.f32 %v304_v41, %v296_v40 }
 0x611   :  { %1357 = vtanh.f32 %v306_v42  ;;  %v371_v2 = vrot.slane %v306_v42, 6 }
 0x617   :  { %v1358_v43 = vpop.eup %1357 }
 0x618   :  { %309 = vrot.lane.b32.xlu1 %v1358_v43, %s1426_s2 }
 0x68a   :  { %v310_v44 = vpop.permute.xlu1 %309 }
 0x68b   :  { %v1586_v45 = vmul.f32 %v310_v44, %v290_v37 }
 0x68d   :  { %v321_v46 = vrot.slane %v1586_v45, 4 }
 0x68f   :  { %322 = vrot.lane.b32.xlu2 %v321_v46, %s1427_s28 }
 0x6e9   :  { %v323_v47 = vpop.permute.xlu2 %322 }
 0x6ea   :  { %1315 = vmatmul.msk.f32.vlgmr.msrb.gmra.mxu1 %vm43_vm0, %v323_v47 }
 0x767   :  { %v343_v48 = vpop.f32.mrf.mxu1 }
 0x768   :  { %v347_v49 = vrot.slane %v343_v48, 2 }
 0x76a   :  { %v349_v50 = vadd.f32 %v347_v49, %v1559_v27 }
 0x76c   :  { %1359 = vtanh.f32 %v349_v50  ;;  %v1316_v52 = vmul.f32 -1.442695, %v349_v50 }
 0x76e   :  { %1361 = vpow2.f32 %v1316_v52 }
 0x772   :  { %v1360_v51 = vpop.eup %1359 }
 0x773   :  { %375 = vrot.lane.b32.xlu0 %v1360_v51, %s1426_s2 }
 0x774   :  { %v1362_v53 = vpop.eup %1361 }
 0x775   :  { %v353_v54 = vadd.f32 1.0, %v1362_v53 }
 0x777   :  { %1363 = vrcp.f32 %v353_v54  ;;  %v365_v60 = vand.u32 2147483648, %v353_v54  ;;  %vm359_vm2 = vweird.f32 %v353_v54  ;;  %v363_v61 = vand.u32 2147483647, %v353_v54 }
 0x779   :  { %v366_v62 = vor.u32 1.1754944e-38, %v365_v60  ;;  %vm364_vm4 = vcmp.eq.f32.partialorder %v363_v61, 8.507059e+37 }
 0x77d   :  { %v1364_v55 = vpop.eup %1363 }
 0x77e   :  { %v355_v56 = vmul.f32 %v1364_v55, %v353_v54  ;;  %vm360_vm1 = vweird.f32 %v1364_v55 }
 0x77f   :  { %vm361_vm3 = vmor %vm359_vm2, %vm360_vm1 }
 0x780   :  { %v356_v57 = vsub.f32 1.0, %v355_v56 }
 0x782   :  { %v357_v58 = vmul.f32 %v1364_v55, %v356_v57 }
 0x784   :  { %v358_v59 = vadd.f32 %v1364_v55, %v357_v58 }
 0x786   :  { %v362_v27 = vsel %vm361_vm3, %v1364_v55, %v358_v59 }
 0x787   :  { %v367_v0 = vsel %vm364_vm4, %v366_v62, %v362_v27 }
 0x788   :  { %v373_v3 = vmul.f32 %v371_v2, %v367_v0 }
 0x7e5   :  { %v376_v63 = vpop.permute.xlu0 %375 }
 0x7e6   :  { %v378_v1 = vmul.f32 %v376_v63, %v367_v0 }
 0x7e8   :  { %380 = vrot.lane.b32.xlu1 %v378_v1, %s1427_s28 }
 0x85a   :  { %v381_v4 = vpop.permute.xlu1 %380 }
 0x85b   :  { %v383_v5 = vadd.f32 %v381_v4, %v373_v3 }
 0x85d   :  { %1365 = vtanh.f32 %v383_v5  ;;  %v449_v26 = vrot.slane %v383_v5, 6 }
 0x863   :  { %v1366_v6 = vpop.eup %1365 }
 0x864   :  { %386 = vrot.lane.b32.xlu2 %v1366_v6, %s1426_s2 }
 0x8be   :  { %v387_v7 = vpop.permute.xlu2 %386 }
 0x8bf   :  { %v1595_v8 = vmul.f32 %v387_v7, %v367_v0 }
 0x8c1   :  { %v402_v9 = vrot.slane %v1595_v8, 6 }
 0x8c3   :  { %403 = vrot.lane.b32.xlu0 %v402_v9, %s1427_s28 }
 0x935   :  { %v404_v10 = vpop.permute.xlu0 %403 }
 0x936   :  { %1317 = vmatmul.msk.f32.vlgmr.msra.gmra.mxu2 %vm43_vm0, %v404_v10 }
 0x9b9   :  { %v424_v11 = vpop.f32.mrf.mxu2 }
 0x9ba   :  { %v427_v12 = vadd.f32 %v424_v11, %v1553_v24 }
 0x9bc   :  { %1367 = vtanh.f32 %v427_v12  ;;  %v1318_v16 = vmul.f32 -1.442695, %v427_v12 }
 0x9be   :  { %1369 = vpow2.f32 %v1318_v16 }
 0x9c2   :  { %v1368_v15 = vpop.eup %1367 }
 0x9c3   :  { %453 = vrot.lane.b32.xlu1 %v1368_v15, %s1426_s2 }
 0x9c4   :  { %v1370_v17 = vpop.eup %1369 }
 0x9c5   :  { %v431_v18 = vadd.f32 1.0, %v1370_v17 }
 0x9c7   :  { %1371 = vrcp.f32 %v431_v18  ;;  %v443_v28 = vand.u32 2147483648, %v431_v18  ;;  %vm437_vm8 = vweird.f32 %v431_v18  ;;  %v441_v29 = vand.u32 2147483647, %v431_v18 }
 0x9c9   :  { %v444_v31 = vor.u32 1.1754944e-38, %v443_v28  ;;  %vm442_vm10 = vcmp.eq.f32.partialorder %v441_v29, 8.507059e+37 }
 0x9cd   :  { %v1372_v19 = vpop.eup %1371 }
 0x9ce   :  { %v433_v20 = vmul.f32 %v1372_v19, %v431_v18  ;;  %vm438_vm5 = vweird.f32 %v1372_v19 }
 0x9cf   :  { %vm439_vm9 = vmor %vm437_vm8, %vm438_vm5 }
 0x9d0   :  { %v434_v21 = vsub.f32 1.0, %v433_v20 }
 0x9d2   :  { %v435_v22 = vmul.f32 %v1372_v19, %v434_v21 }
 0x9d4   :  { %v436_v23 = vadd.f32 %v1372_v19, %v435_v22 }
 0x9d6   :  { %v440_v30 = vsel %vm439_vm9, %v1372_v19, %v436_v23 }
 0x9d7   :  { %v445_v33 = vsel %vm442_vm10, %v444_v31, %v440_v30  ;;  %vm240_vm10 = vcmask 125954  }
 0x9d8   :  { %v451_v35 = vmul.f32 %v449_v26, %v445_v33 }
 0xa35   :  { %v454_v32 = vpop.permute.xlu1 %453 }
 0xa36   :  { %v456_v34 = vmul.f32 %v454_v32, %v445_v33 }
 0xa38   :  { %458 = vrot.lane.b32.xlu2 %v456_v34, %s1427_s28 }
 0xa92   :  { %v459_v36 = vpop.permute.xlu2 %458 }
 0xa93   :  { %v461_v37 = vadd.f32 %v459_v36, %v451_v35 }
 0xa95   :  { %1373 = vtanh.f32 %v461_v37  ;;  %v524_v27 = vrot.slane %v461_v37, 6 }
 0xa9b   :  { %v1374_v38 = vpop.eup %1373 }
 0xa9c   :  { %464 = vrot.lane.b32.xlu0 %v1374_v38, %s1426_s2 }
 0xb0e   :  { %v465_v39 = vpop.permute.xlu0 %464 }
 0xb0f   :  { %v467_v40 = vmul.f32 %v465_v39, %v445_v33 }
 0xb11   :  { %469 = vrot.lane.b32.xlu1 %v467_v40, %s1427_s28 }
 0xb83   :  { %v1605_v41 = vpop.permute.xlu1 %469 }
 0xb84   :  { %1319 = vmatmul.msk.f32.vlgmr.msra.gmra.mxu3 %vm43_vm0, %v1605_v41 }
 0xc07   :  { %v496_v42 = vpop.f32.mrf.mxu3 }
 0xc08   :  { %v500_v43 = vrot.slane %v496_v42, 6 }
 0xc0a   :  { %v502_v44 = vadd.f32 %v500_v43, %v1555_v25 }
 0xc0c   :  { %1375 = vtanh.f32 %v502_v44  ;;  %v1320_v47 = vmul.f32 -1.442695, %v502_v44 }
 0xc0e   :  { %1377 = vpow2.f32 %v1320_v47 }
 0xc12   :  { %v1376_v46 = vpop.eup %1375 }
 0xc13   :  { %528 = vrot.lane.b32.xlu2 %v1376_v46, %s1426_s2 }
 0xc14   :  { %v1378_v48 = vpop.eup %1377 }
 0xc15   :  { %v506_v49 = vadd.f32 1.0, %v1378_v48 }
 0xc17   :  { %1379 = vrcp.f32 %v506_v49  ;;  %v518_v55 = vand.u32 2147483648, %v506_v49  ;;  %vm512_vm12 = vweird.f32 %v506_v49  ;;  %v516_v56 = vand.u32 2147483647, %v506_v49 }
 0xc19   :  { %v519_v58 = vor.u32 1.1754944e-38, %v518_v55  ;;  %vm517_vm14 = vcmp.eq.f32.partialorder %v516_v56, 8.507059e+37 }
 0xc1d   :  { %v1380_v50 = vpop.eup %1379 }
 0xc1e   :  { %v508_v51 = vmul.f32 %v1380_v50, %v506_v49  ;;  %vm513_vm11 = vweird.f32 %v1380_v50 }
 0xc1f   :  { %vm514_vm13 = vmor %vm512_vm12, %vm513_vm11  ;;  %vm242_vm11 = vcmask 257154   ;;  %vm317_vm12 = vcmask 128004  }
 0xc20   :  { %v509_v52 = vsub.f32 1.0, %v508_v51 }
 0xc22   :  { %v510_v53 = vmul.f32 %v1380_v50, %v509_v52 }
 0xc24   :  { %v511_v54 = vadd.f32 %v1380_v50, %v510_v53 }
 0xc26   :  { %v515_v57 = vsel %vm514_vm13, %v1380_v50, %v511_v54  ;;  %vm319_vm13 = vcmask 259204  }
 0xc27   :  { %v520_v60 = vsel %vm517_vm14, %v519_v58, %v515_v57  ;;  %vm394_vm14 = vcmask 130054  }
 0xc28   :  { %v526_v62 = vmul.f32 %v524_v27, %v520_v60 }
 0xc6d   :  { %v529_v59 = vpop.permute.xlu2 %528 }
 0xc6e   :  { %v531_v61 = vmul.f32 %v529_v59, %v520_v60 }
 0xc70   :  { %533 = vrot.lane.b32.xlu0 %v531_v61, %s1427_s28 }
 0xce2   :  { %v534_v63 = vpop.permute.xlu0 %533 }
 0xce3   :  { %v536_v0 = vadd.f32 %v534_v63, %v526_v62 }
 0xce5   :  { %1381 = vtanh.f32 %v536_v0  ;;  %v599_v31 = vrot.slane %v536_v0, 6 }
 0xceb   :  { %v1382_v1 = vpop.eup %1381 }
 0xcec   :  { %539 = vrot.lane.b32.xlu1 %v1382_v1, %s1426_s2 }
 0xd5e   :  { %v540_v2 = vpop.permute.xlu1 %539 }
 0xd5f   :  { %v542_v3 = vmul.f32 %v540_v2, %v520_v60 }
 0xd61   :  { %v549_v4 = vrot.slane %v542_v3, 2 }
 0xd63   :  { %550 = vrot.lane.b32.xlu2 %v549_v4, %s1427_s28  ;;  %v703_v4 = vld [vmem:[%s1880_s4 + $0x10] sm:$0xff] }
 0xdbd   :  { %v551_v5 = vpop.permute.xlu2 %550 }
 0xdbe   :  { %1321 = vmatmul.msk.f32.vlgmr.msrb.gmra.mxu0 %vm43_vm0, %v551_v5  ;;  %v702_v5 = vld [vmem:[%s1880_s4 + $0x8] sm:$0xff] }
 0xe3b   :  { %v571_v6 = vpop.f32.mrf.mxu0 }
 0xe3c   :  { %v575_v7 = vrot.slane %v571_v6, 4  ;;  %v701_v6 = vld [vmem:[%s1880_s4] sm:$0xff] }
 0xe3e   :  { %v577_v9 = vadd.f32 %v575_v7, %v1553_v24 }
 0xe40   :  { %1383 = vtanh.f32 %v577_v9  ;;  %v1322_v11 = vmul.f32 -1.442695, %v577_v9 }
 0xe42   :  { %1385 = vpow2.f32 %v1322_v11  ;;  %v1333_v11 = vld [vmem:[%s1883_s7] ss:$0 sm:$0xff]  ;;  %s1428_s7 = smov [#allocation3]  }
 0xe46   :  { %v1384_v10 = vpop.eup %1383 }
 0xe47   :  { %603 = vrot.lane.b32.xlu0 %v1384_v10, %s1426_s2  ;;  %v1663_v10 = vld [vmem:[%s1881_s5] ss:$0 sm:$0xff] }
 0xe48   :  { %v1386_v12 = vpop.eup %1385 }
 0xe49   :  { %v581_v15 = vadd.f32 1.0, %v1386_v12 }
 0xe4b   :  { %1387 = vrcp.f32 %v581_v15  ;;  %v593_v21 = vand.u32 2147483648, %v581_v15  ;;  %vm587_vm1 = vweird.f32 %v581_v15  ;;  %v591_v22 = vand.u32 2147483647, %v581_v15 }
 0xe4d   :  { %v594_v23 = vor.u32 1.1754944e-38, %v593_v21  ;;  %vm592_vm3 = vcmp.eq.f32.partialorder %v591_v22, 8.507059e+37 }
 0xe51   :  { %v1388_v16 = vpop.eup %1387 }
 0xe52   :  { %v583_v17 = vmul.f32 %v1388_v16, %v581_v15  ;;  %vm588_vm15 = vweird.f32 %v1388_v16 }
 0xe53   :  { %vm589_vm2 = vmor %vm587_vm1, %vm588_vm15  ;;  %vm396_vm15 = vcmask 261254  }
 0xe54   :  { %v584_v18 = vsub.f32 1.0, %v583_v17  ;;  %v1672_v17 = vld [vmem:[%s1882_s6] sm:$0xff] }
 0xe56   :  { %v585_v19 = vmul.f32 %v1388_v16, %v584_v18 }
 0xe58   :  { %v586_v20 = vadd.f32 %v1388_v16, %v585_v19 }
 0xe5a   :  { %v590_v24 = vsel %vm589_vm2, %v1388_v16, %v586_v20  ;;  %vm1129_vm2 = vcmask 1041408  }
 0xe5b   :  { %v595_v29 = vsel %vm592_vm3, %v594_v23, %v590_v24 }
 0xe5c   :  { %v601_v32 = vmul.f32 %v599_v31, %v595_v29 }
 0xeb9   :  { %v604_v28 = vpop.permute.xlu0 %603 }
 0xeba   :  { %v606_v30 = vmul.f32 %v604_v28, %v595_v29 }
 0xebc   :  { %608 = vrot.lane.b32.xlu1 %v606_v30, %s1427_s28 }
 0xf2e   :  { %v609_v33 = vpop.permute.xlu1 %608 }
 0xf2f   :  { %v611_v34 = vadd.f32 %v609_v33, %v601_v32 }
 0xf31   :  { %1389 = vtanh.f32 %v611_v34  ;;  %v674_v59 = vrot.slane %v611_v34, 6 }
 0xf37   :  { %v1390_v26 = vpop.eup %1389 }
 0xf38   :  { %614 = vrot.lane.b32.xlu2 %v1390_v26, %s1426_s2 }
 0xf92   :  { %v615_v35 = vpop.permute.xlu2 %614 }
 0xf93   :  { %v617_v36 = vmul.f32 %v615_v35, %v595_v29 }
 0xf95   :  { %v624_v37 = vrot.slane %v617_v36, 4 }
 0xf97   :  { %625 = vrot.lane.b32.xlu0 %v624_v37, %s1427_s28 }
0x1009   :  { %v626_v38 = vpop.permute.xlu0 %625 }
0x100a   :  { %1323 = vmatmul.msk.f32.vlgmr.msra.gmra.mxu1 %vm43_vm0, %v626_v38 }
0x1087   :  { %v646_v39 = vpop.f32.mrf.mxu1 }
0x1088   :  { %v650_v40 = vrot.slane %v646_v39, 2 }
0x108a   :  { %v652_v42 = vadd.f32 %v650_v40, %v1555_v25 }
0x108c   :  { %1391 = vtanh.f32 %v652_v42  ;;  %v1324_v44 = vmul.f32 -1.442695, %v652_v42 }
0x108e   :  { %1393 = vpow2.f32 %v1324_v44 }
0x1092   :  { %v1392_v43 = vpop.eup %1391 }
0x1093   :  { %678 = vrot.lane.b32.xlu1 %v1392_v43, %s1426_s2 }
0x1094   :  { %v1394_v46 = vpop.eup %1393 }
0x1095   :  { %v656_v47 = vadd.f32 1.0, %v1394_v46 }
0x1097   :  { %1395 = vrcp.f32 %v656_v47  ;;  %v668_v25 = vand.u32 2147483648, %v656_v47  ;;  %vm662_vm5 = vweird.f32 %v656_v47  ;;  %v666_v53 = vand.u32 2147483647, %v656_v47 }
0x1099   :  { %v669_v55 = vor.u32 1.1754944e-38, %v668_v25  ;;  %vm667_vm9 = vcmp.eq.f32.partialorder %v666_v53, 8.507059e+37 }
0x109b   :  { %237 = vrot.lane.b32.xlu1 %v1577_v14, %s1427_s28 }
0x109d   :  { %v1396_v48 = vpop.eup %1395 }
0x109e   :  { %v658_v49 = vmul.f32 %v1396_v48, %v656_v47  ;;  %vm663_vm4 = vweird.f32 %v1396_v48 }
0x109f   :  { %vm664_vm8 = vmor %vm662_vm5, %vm663_vm4 }
0x10a0   :  { %v659_v50 = vsub.f32 1.0, %v658_v49 }
0x10a2   :  { %v660_v51 = vmul.f32 %v1396_v48, %v659_v50 }
0x10a3   :  { %544 = vrot.lane.b32.xlu1 %v542_v3, %s1427_s28 }
0x10a4   :  { %v661_v52 = vadd.f32 %v1396_v48, %v660_v51 }
0x10a6   :  { %v665_v54 = vsel %vm664_vm8, %v1396_v48, %v661_v52 }
0x10a7   :  { %v670_v56 = vsel %vm667_vm9, %v669_v55, %v665_v54 }
0x10a8   :  { %v676_v60 = vmul.f32 %v674_v59, %v670_v56 }
0x1105   :  { %v679_v14 = vpop.permute.xlu1 %678 }
0x1106   :  { %v681_v57 = vmul.f32 %v679_v14, %v670_v56 }
0x1108   :  { %683 = vrot.lane.b32.xlu2 %v681_v57, %s1427_s28 }
0x110d   :  { %v238_v58 = vpop.permute.xlu1 %237 }
0x110e   :  { %241 = vst.msk [vmem:[#allocation2] sm:$0xc] %vm240_vm10, %v238_v58 }
0x110f   :  { %243 = vst.msk [vmem:[#allocation2 + $0xa] sm:$0xc] %vm242_vm11, %v238_v58 }
0x1110   :  { %314 = vrot.lane.b32.xlu2 %v1586_v45, %s1427_s28 }
0x1115   :  { %v545_v0 = vpop.permute.xlu1 %544 }
0x1118   :  { %619 = vrot.lane.b32.xlu2 %v617_v36, %s1427_s28 }
0x1162   :  { %v684_v61 = vpop.permute.xlu2 %683 }
0x1163   :  { %v686_v27 = vadd.f32 %v684_v61, %v676_v60 }
0x1165   :  { %1397 = vtanh.f32 %v686_v27 }
0x116a   :  { %v315_v62 = vpop.permute.xlu2 %314 }
0x116b   :  { %v1398_v63 = vpop.eup %1397  ;;  %318 = vst.msk [vmem:[#allocation2] sm:$0x30] %vm317_vm12, %v315_v62 }
0x116c   :  { %320 = vst.msk [vmem:[#allocation2 + $0x6] sm:$0x30] %vm319_vm13, %v315_v62  ;;  %689 = vrot.lane.b32.xlu0 %v1398_v63, %s1426_s2 }
0x116d   :  { %547 = vst.msk [vmem:[#allocation2 + $0x8] sm:$0xc] %vm240_vm10, %v545_v0 }
0x116e   :  { %548 = vst.msk [vmem:[#allocation2 + $0x2] sm:$0xc] %vm242_vm11, %v545_v0 }
0x1172   :  { %v620_v45 = vpop.permute.xlu2 %619 }
0x1173   :  { %622 = vst.msk [vmem:[#allocation2 + $0x8] sm:$0x30] %vm317_vm12, %v620_v45 }
0x1174   :  { %623 = vst.msk [vmem:[#allocation2 - $0x2] sm:$0x30] %vm319_vm13, %v620_v45  ;;  %391 = vrot.lane.b32.xlu0 %v1595_v8, %s1427_s28  ;;  %v704_v8 = vld [vmem:[%s1880_s4 + $0x18] sm:$0xff] }
0x1175   :  { %727 = vmatpush.msrb.mxu2 %v704_v8 }
0x1177   :  { %728 = vmatpush.msrb.mxu2 %v703_v4 }
0x1179   :  { %729 = vmatpush.msrb.mxu2 %v702_v5 }
0x117b   :  { %730 = vmatpush.msrb.mxu2 %v701_v6 }
0x11de   :  { %v690_v1 = vpop.permute.xlu0 %689 }
0x11df   :  { %v692_v2 = vmul.f32 %v690_v1, %v670_v56 }
0x11e1   :  { %694 = vrot.lane.b32.xlu0 %v692_v2, %s1427_s28 }
0x11e6   :  { %v392_v3 = vpop.permute.xlu0 %391 }
0x11e7   :  { %395 = vst.msk [vmem:[#allocation2] sm:$0xc0] %vm394_vm14, %v392_v3 }
0x11e8   :  { %397 = vst.msk [vmem:[#allocation2 + $0x2] sm:$0xc0] %vm396_vm15, %v392_v3 }
0x11e9   :  { %472 = vst.msk [vmem:[#allocation2 + $0x8] sm:$0x3] %vm163_vm6, %v1605_v41  ;;  %vm795_vm6 = vcmask 64512  }
0x11ea   :  { %473 = vst.msk [vmem:[#allocation2 + $0x6] sm:$0x3] %vm165_vm7, %v1605_v41 }
0x1253   :  { %v695_v41 = vpop.permute.xlu0 %694 }
0x1254   :  { %697 = vst.msk [vmem:[#allocation2 + $0x8] sm:$0xc0] %vm394_vm14, %v695_v41  ;;  %vm1155_vm14 = vcmask 58368  }
0x1255   :  { %698 = vst.msk [vmem:[#allocation2 - $0x6] sm:$0xc0] %vm396_vm15, %v695_v41 }
0x125b   :  { %v700_v9 = vld [vmem:[#allocation2 + $0x8] sm:$0xff] }
0x125c   :  { %v699_v7 = vld [vmem:[#allocation2] sm:$0xff] }
0x125d   :  { %1325 = vmatmul.msk.f32.vlgmr.msrb.gmra.mxu2 %vm43_vm0, %v699_v7 }
0x1265   :  { %1326 = vmatmul.msk.f32.gmra.mxu2 %vm43_vm0, %v700_v9  ;;  %vm792_vm0 = vcmask 1041409  }
0x12e0   :  { %v732_v12 = vpop.f32.mrf.mxu2 }
0x12e1   :  { %v733_v15 = vadd.f32 %v1663_v10, %v732_v12 }
0x12e3   :  { %v743_v16 = vadd.f32 %v1333_v11, %v733_v15  ;;  %v798_v31 = vrot.slane %v733_v15, 2  ;;  %v852_v44 = vrot.slane %v733_v15, 4  ;;  %v906_v56 = vrot.slane %v733_v15, 6 }
0x12e5   :  { %v746_v18 = vperm.slane %v743_v16, 0  ;;  %v745_v19 = vrot.slane %v743_v16, 1 }
0x12e7   :  { %v1675_v20 = vadd.f32 %v746_v18, %v1672_v17  ;;  %v747_v21 = vperm.slane %v745_v19, 0 }
0x12e8   :  { %v735_v0 = vpop.f32.mrf.mxu2 }
0x12e9   :  { %752 = vmax.xlane.f32.xlu1 %v1675_v20  ;;  %v1679_v22 = vadd.f32 %v747_v21, %v1672_v17  ;;  %v736_v3 = vadd.f32 %v1663_v10, %v735_v0 }
0x12eb   :  { %754 = vmax.xlane.f32.xlu2 %v1679_v22  ;;  %v1013_v19 = vrot.slane %v736_v3, 2 }
0x135c   :  { %v1682_v24 = vpop.xlane.xlu1 %752 }
0x135d   :  { %v790_v28 = vperm.slane %v1682_v24, %v1547_v13 }
0x135e   :  { %v1684_v23 = vpop.xlane.xlu2 %754 }
0x135f   :  { %v791_v29 = vperm.slane %v1684_v23, %v1547_v13 }
0x1361   :  { %v793_v30 = vsel %vm792_vm0, %v791_v29, %v790_v28 }
0x1362   :  { %v796_v32 = vsel %vm795_vm6, %v793_v30, -1e+30 }
0x1363   :  { %v800_v33 = vadd.f32 %v798_v31, %v796_v32 }
0x1365   :  { %v803_v34 = vperm.slane %v800_v33, 0  ;;  %v802_v26 = vrot.slane %v800_v33, 1 }
0x1367   :  { %v1693_v35 = vadd.f32 %v803_v34, %v1672_v17  ;;  %v804_v36 = vperm.slane %v802_v26, 0 }
0x1369   :  { %809 = vmax.xlane.f32.xlu0 %v1693_v35  ;;  %v1697_v37 = vadd.f32 %v804_v36, %v1672_v17 }
0x136b   :  { %811 = vmax.xlane.f32.xlu2 %v1697_v37 }
0x13dc   :  { %v1700_v38 = vpop.xlane.xlu0 %809 }
0x13dd   :  { %v847_v40 = vperm.slane %v1700_v38, %v1547_v13 }
0x13de   :  { %v1702_v39 = vpop.xlane.xlu2 %811 }
0x13df   :  { %v848_v42 = vperm.slane %v1702_v39, %v1547_v13 }
0x13e1   :  { %v849_v43 = vsel %vm792_vm0, %v848_v42, %v847_v40 }
0x13e2   :  { %v851_v46 = vsel %vm795_vm6, %v849_v43, -1e+30  ;;  %v1067_v43 = vrot.slane %v736_v3, 4 }
0x13e3   :  { %v854_v47 = vadd.f32 %v852_v44, %v851_v46 }
0x13e5   :  { %v857_v48 = vperm.slane %v854_v47, 0  ;;  %v856_v49 = vrot.slane %v854_v47, 1 }
0x13e7   :  { %v1711_v50 = vadd.f32 %v857_v48, %v1672_v17  ;;  %v858_v51 = vperm.slane %v856_v49, 0 }
0x13e9   :  { %863 = vmax.xlane.f32.xlu1 %v1711_v50  ;;  %v1715_v52 = vadd.f32 %v858_v51, %v1672_v17 }
0x13eb   :  { %865 = vmax.xlane.f32.xlu2 %v1715_v52 }
0x145c   :  { %v1718_v25 = vpop.xlane.xlu1 %863 }
0x145d   :  { %v901_v54 = vperm.slane %v1718_v25, %v1547_v13 }
0x145e   :  { %v1720_v53 = vpop.xlane.xlu2 %865 }
0x145f   :  { %v902_v55 = vperm.slane %v1720_v53, %v1547_v13 }
0x1461   :  { %v903_v14 = vsel %vm792_vm0, %v902_v55, %v901_v54 }
0x1462   :  { %v905_v57 = vsel %vm795_vm6, %v903_v14, -1e+30 }
0x1463   :  { %v908_v58 = vadd.f32 %v906_v56, %v905_v57 }
0x1465   :  { %v911_v59 = vperm.slane %v908_v58, 0  ;;  %v910_v60 = vrot.slane %v908_v58, 1 }
0x1467   :  { %v1729_v61 = vadd.f32 %v911_v59, %v1672_v17  ;;  %v912_v27 = vperm.slane %v910_v60, 0 }
0x1469   :  { %917 = vmax.xlane.f32.xlu0 %v1729_v61  ;;  %v1733_v62 = vadd.f32 %v912_v27, %v1672_v17 }
0x146b   :  { %919 = vmax.xlane.f32.xlu1 %v1733_v62 }
0x14dc   :  { %v1736_v63 = vpop.xlane.xlu0 %917 }
0x14dd   :  { %v955_v1 = vperm.slane %v1736_v63, %v1547_v13 }
0x14de   :  { %v1738_v45 = vpop.xlane.xlu1 %919 }
0x14df   :  { %v956_v2 = vperm.slane %v1738_v45, %v1547_v13 }
0x14e1   :  { %v957_v8 = vsel %vm792_vm0, %v956_v2, %v955_v1  ;;  %v1121_v2 = vrot.slane %v736_v3, 6 }
0x14e2   :  { %v959_v4 = vsel %vm795_vm6, %v957_v8, -1e+30 }
0x14e3   :  { %v960_v5 = vadd.f32 %v959_v4, %v736_v3 }
0x14e5   :  { %v963_v6 = vperm.slane %v960_v5, 0  ;;  %v962_v41 = vrot.slane %v960_v5, 1 }
0x14e7   :  { %v1748_v7 = vadd.f32 %v963_v6, %v1672_v17  ;;  %v964_v9 = vperm.slane %v962_v41, 0 }
0x14e9   :  { %969 = vmax.xlane.f32.xlu2 %v1748_v7  ;;  %v1752_v11 = vadd.f32 %v964_v9, %v1672_v17 }
0x14eb   :  { %971 = vmax.xlane.f32.xlu0 %v1752_v11 }
0x155c   :  { %v1755_v12 = vpop.xlane.xlu2 %969 }
0x155d   :  { %v1007_v15 = vperm.slane %v1755_v12, %v1547_v13  ;;  %vm973_vm10 = vcmp.ge.f32.partialorder %v1748_v7, %v1755_v12 }
0x155e   :  { %v1757_v10 = vpop.xlane.xlu0 %971 }
0x155f   :  { %v1008_v16 = vperm.slane %v1757_v10, %v1547_v13 }
0x1561   :  { %v1009_v18 = vsel %vm792_vm0, %v1008_v16, %v1007_v15 }
0x1562   :  { %v1011_v21 = vsel %vm795_vm6, %v1009_v18, -1e+30 }
0x1563   :  { %v1015_v28 = vadd.f32 %v1013_v19, %v1011_v21 }
0x1565   :  { %v1018_v29 = vperm.slane %v1015_v28, 0  ;;  %v1017_v30 = vrot.slane %v1015_v28, 1 }
0x1567   :  { %v1022_v31 = vadd.f32 %v1018_v29, %v1672_v17  ;;  %v1019_v32 = vperm.slane %v1017_v30, 0 }
0x1569   :  { %1024 = vmax.xlane.f32.xlu1 %v1022_v31  ;;  %v1023_v33 = vadd.f32 %v1019_v32, %v1672_v17 }
0x156b   :  { %1026 = vmax.xlane.f32.xlu2 %v1023_v33 }
0x15dc   :  { %v1025_v34 = vpop.xlane.xlu1 %1024 }
0x15dd   :  { %v1062_v36 = vperm.slane %v1025_v34, %v1547_v13  ;;  %vm1028_vm3 = vcmp.ge.f32.partialorder %v1022_v31, %v1025_v34 }
0x15de   :  { %v1027_v26 = vpop.xlane.xlu2 %1026  ;;  %v1030_v18 = vsel %vm1028_vm3, %v1547_v13, 128 }
0x15df   :  { %v1063_v40 = vperm.slane %v1027_v26, %v1547_v13  ;;  %vm1029_vm4 = vcmp.ge.f32.partialorder %v1023_v33, %v1027_v26 }
0x15e0   :  { %v1031_v29 = vsel %vm1029_vm4, %v1547_v13, 128  ;;  %vm922_vm4 = vcmp.ge.f32.partialorder %v1733_v62, %v1738_v45 }
0x15e1   :  { %v1064_v42 = vsel %vm792_vm0, %v1063_v40, %v1062_v36  ;;  %v1033_v36 = vshra.s32 %v1030_v18, 16  ;;  %v1047_v34 = vshra.s32 %v1031_v29, 16 }
0x15e2   :  { %v1066_v44 = vsel %vm795_vm6, %v1064_v42, -1e+30 }
0x15e3   :  { %v1069_v46 = vadd.f32 %v1067_v43, %v1066_v44  ;;  %v1035_v26 = vcvt.s32.f32 %v1033_v36  ;;  %v1049_v43 = vcvt.s32.f32 %v1047_v34 }
0x15e5   :  { %v1072_v47 = vperm.slane %v1069_v46, 0  ;;  %v1071_v48 = vrot.slane %v1069_v46, 1 }
0x15e7   :  { %v1076_v49 = vadd.f32 %v1072_v47, %v1672_v17  ;;  %v1073_v51 = vperm.slane %v1071_v48, 0 }
0x15e9   :  { %1078 = vmax.xlane.f32.xlu0 %v1076_v49  ;;  %v1077_v54 = vadd.f32 %v1073_v51, %v1672_v17  ;;  %v1334_v17 = vld [vmem:[%s1884_s8] ss:$0 sm:$0xff]  ;;  %s1297_s8 = sshll.u32 %s1428_s7, 4  ;;  %s1298_s8 = int_to_ptr.vmem [resolvable:$true] %s1297_s8 }
0x15eb   :  { %1080 = vmax.xlane.f32.xlu1 %v1077_v54 }
0x165c   :  { %v1079_v55 = vpop.xlane.xlu0 %1078 }
0x165d   :  { %vm1082_vm7 = vcmp.ge.f32.partialorder %v1076_v49, %v1079_v55  ;;  %v1116_v57 = vperm.slane %v1079_v55, %v1547_v13 }
0x165e   :  { %v1084_v14 = vsel %vm1082_vm7, %v1547_v13, 128  ;;  %v1081_v56 = vpop.xlane.xlu1 %1080 }
0x165f   :  { %vm1083_vm1 = vcmp.ge.f32.partialorder %v1077_v54, %v1081_v56  ;;  %v1117_v58 = vperm.slane %v1081_v56, %v1547_v13  ;;  %v1087_v59 = vshra.s32 %v1084_v14, 16  ;;  %v1086_v9 = vand.u32 65535, %v1084_v14 }
0x1660   :  { %v1085_v60 = vsel %vm1083_vm1, %v1547_v13, 128  ;;  %vm921_vm1 = vcmp.ge.f32.partialorder %v1729_v61, %v1736_v63 }
0x1661   :  { %v1118_v27 = vsel %vm792_vm0, %v1117_v58, %v1116_v57  ;;  %v1089_v0 = vcvt.s32.f32 %v1087_v59  ;;  %v1101_v1 = vshra.s32 %v1085_v60, 16  ;;  %v1100_v15 = vand.u32 65535, %v1085_v60 }
0x1662   :  { %v1120_v8 = vsel %vm795_vm6, %v1118_v27, -1e+30  ;;  %v1088_v3 = vcvt.s32.f32 %v1086_v9  ;;  %v1046_v60 = vand.u32 65535, %v1031_v29  ;;  %vm974_vm6 = vcmp.ge.f32.partialorder %v1752_v11, %v1757_v10 }
0x1663   :  { %1090 = vmin.xlane.f32.xlu0 %v1089_v0  ;;  %v1103_v4 = vcvt.s32.f32 %v1101_v1  ;;  %v1123_v5 = vadd.f32 %v1121_v2, %v1120_v8  ;;  %v1102_v28 = vcvt.s32.f32 %v1100_v15 }
0x1665   :  { %1104 = vmin.xlane.f32.xlu1 %v1103_v4  ;;  %v1128_v6 = vadd.f32 %v1334_v17, %v1123_v5  ;;  %v1048_v17 = vcvt.s32.f32 %v1046_v60 }
0x1667   :  { %v1130_v41 = vsel %vm1129_vm2, %v1128_v6, -inf }
0x1668   :  { %1131 = vmax.xlane.f32.xlu2 %v1130_v41  ;;  %v1032_v41 = vand.u32 65535, %v1030_v18 }
0x166a   :  { %v1034_v15 = vcvt.s32.f32 %v1032_v41 }
0x16d6   :  { %v1091_v16 = vpop.xlane.xlu0 %1090 }
0x16d7   :  { %vm1092_vm5 = vcmp.eq.f32.partialorder %v1089_v0, %v1091_v16  ;;  %v1097_v44 = vcvt.f32.s32 %v1091_v16 }
0x16d8   :  { %v1105_v19 = vpop.xlane.xlu1 %1104  ;;  %v1093_v21 = vsel %vm1092_vm5, %v1088_v3, inf  ;;  %vm867_vm5 = vcmp.ge.f32.partialorder %v1711_v50, %v1718_v25 }
0x16d9   :  { %1094 = vmin.xlane.f32.xlu0 %v1093_v21  ;;  %vm1106_vm8 = vcmp.eq.f32.partialorder %v1103_v4, %v1105_v19  ;;  %v1111_v46 = vcvt.f32.s32 %v1105_v19  ;;  %v1098_v48 = vshll.u32 %v1097_v44, 16  ;;  %v975_v4 = vsel %vm973_vm10, %v1547_v13, 128 }
0x16da   :  { %v1107_v30 = vsel %vm1106_vm8, %v1102_v28, inf  ;;  %v978_v9 = vshra.s32 %v975_v4, 16 }
0x16db   :  { %v1132_v32 = vpop.xlane.xlu2 %1131  ;;  %1108 = vmin.xlane.f32.xlu1 %v1107_v30  ;;  %v1112_v54 = vshll.u32 %v1111_v46, 16 }
0x16dc   :  { %vm1133_vm9 = vcmp.ge.f32.partialorder %v1128_v6, %v1132_v32  ;;  %v980_v3 = vcvt.s32.f32 %v978_v9 }
0x16dd   :  { %v1134_v31 = vsel %vm1133_vm9, %v1547_v13, 128 }
0x16de   :  { %v1135_v33 = vsel %vm1129_vm2, %v1134_v31, 2147483647 }
0x16df   :  { %v1137_v40 = vshra.s32 %v1135_v33, 16  ;;  %v1136_v57 = vand.u32 65535, %v1135_v33  ;;  %v976_v33 = vsel %vm974_vm6, %v1547_v13, 128 }
0x16e1   :  { %1036 = vmin.xlane.f32.xlu0 %v1035_v26  ;;  %v1139_v42 = vcvt.s32.f32 %v1137_v40  ;;  %v1138_v2 = vcvt.s32.f32 %v1136_v57  ;;  %v977_v40 = vand.u32 65535, %v975_v4 }
0x16e3   :  { %1140 = vmin.xlane.f32.xlu2 %v1139_v42  ;;  %1050 = vmin.xlane.f32.xlu1 %v1049_v43 }
0x174c   :  { %v1095_v47 = vpop.xlane.xlu0 %1094 }
0x174d   :  { %v1096_v49 = vcvt.f32.s32 %v1095_v47 }
0x174e   :  { %v1109_v51 = vpop.xlane.xlu1 %1108 }
0x174f   :  { %v1099_v55 = vadd.s32 %v1098_v48, %v1096_v49  ;;  %v1110_v14 = vcvt.f32.s32 %v1109_v51 }
0x1751   :  { %v1113_v56 = vadd.s32 %v1112_v54, %v1110_v14  ;;  %v1151_v58 = vperm.slane %v1099_v55, %v1547_v13 }
0x1753   :  { %v1152_v59 = vperm.slane %v1113_v56, %v1547_v13 }
0x1754   :  { %v1037_v6 = vpop.xlane.xlu0 %1036 }
0x1755   :  { %v1153_v27 = vsel %vm792_vm0, %v1152_v59, %v1151_v58  ;;  %vm1038_vm13 = vcmp.eq.f32.partialorder %v1035_v26, %v1037_v6  ;;  %v1043_v48 = vcvt.f32.s32 %v1037_v6  ;;  %v923_v6 = vsel %vm921_vm1, %v1547_v13, 128 }
0x1756   :  { %v1141_v0 = vpop.xlane.xlu2 %1140  ;;  %v1051_v1 = vpop.xlane.xlu1 %1050  ;;  %v1039_v16 = vsel %vm1038_vm13, %v1034_v15, inf  ;;  %vm756_vm1 = vcmp.ge.f32.partialorder %v1675_v20, %v1682_v24 }
0x1757   :  { %vm1142_vm11 = vcmp.eq.f32.partialorder %v1139_v42, %v1141_v0  ;;  %vm1052_vm12 = vcmp.eq.f32.partialorder %v1049_v43, %v1051_v1  ;;  %v1147_v7 = vcvt.f32.s32 %v1141_v0  ;;  %v992_v42 = vshra.s32 %v976_v33, 16 }
0x1758   :  { %v1143_v8 = vsel %vm1142_vm11, %v1138_v2, inf  ;;  %v1053_v5 = vsel %vm1052_vm12, %v1048_v17, inf  ;;  %v979_v43 = vcvt.s32.f32 %v977_v40  ;;  %v1057_v11 = vcvt.f32.s32 %v1051_v1 }
0x1759   :  { %1144 = vmin.xlane.f32.xlu2 %v1143_v8  ;;  %1054 = vmin.xlane.f32.xlu0 %v1053_v5  ;;  %v1148_v19 = vshll.u32 %v1147_v7, 16  ;;  %v994_v44 = vcvt.s32.f32 %v992_v42  ;;  %v1044_v49 = vshll.u32 %v1043_v48, 16  ;;  %v991_v0 = vand.u32 65535, %v976_v33 }
0x175a   :  { %v1058_v54 = vshll.u32 %v1057_v11, 16  ;;  %v926_v7 = vshra.s32 %v923_v6, 16  ;;  %vm868_vm11 = vcmp.ge.f32.partialorder %v1715_v52, %v1720_v53  ;;  %vm813_vm12 = vcmp.ge.f32.partialorder %v1693_v35, %v1700_v38 }
0x175b   :  { %v993_v4 = vcvt.s32.f32 %v991_v0  ;;  %v870_v0 = vsel %vm868_vm11, %v1547_v13, 128 }
0x1761   :  { %1040 = vmin.xlane.f32.xlu2 %v1039_v16  ;;  %981 = vmin.xlane.f32.xlu0 %v980_v3 }
0x17cc   :  { %v1145_v12 = vpop.xlane.xlu2 %1144  ;;  %v1055_v29 = vpop.xlane.xlu0 %1054 }
0x17cd   :  { %v1146_v21 = vcvt.f32.s32 %v1145_v12  ;;  %v1056_v51 = vcvt.f32.s32 %v1055_v29 }
0x17cf   :  { %v1793_v28 = vadd.s32 %v1148_v19, %v1146_v21  ;;  %v1059_v57 = vadd.s32 %v1058_v54, %v1056_v51  ;;  %v928_v19 = vcvt.s32.f32 %v926_v7 }
0x17d1   :  { %vm1150_vm15 = vcmp.eq.s32.totalorder %v1547_v13, %v1793_v28  ;;  %v1171_v2 = vperm.slane %v1059_v57, %v1547_v13 }
0x17d2   :  { %v1154_v30 = vsel %vm1150_vm15, %v1153_v27, 0 }
0x17d3   :  { %v1156_v18 = vsel %vm1155_vm14, %v1154_v30, 0 }
0x17d4   :  { %v1157_v32 = vand.u32 65535, %v1156_v18  ;;  %v1158_v36 = vshrl.u32 %v1156_v18, 16  ;;  %v982_v26 = vpop.xlane.xlu0 %981  ;;  %v1041_v47 = vpop.xlane.xlu2 %1040 }
0x17d5   :  { %vm983_vm7 = vcmp.eq.f32.partialorder %v980_v3, %v982_v26  ;;  %v1042_v10 = vcvt.f32.s32 %v1041_v47  ;;  %v924_v3 = vsel %vm922_vm4, %v1547_v13, 128  ;;  %v988_v18 = vcvt.f32.s32 %v982_v26 }
0x17d6   :  { %v1159_v31 = vcvt.s32.f32 %v1157_v32  ;;  %v1160_v34 = vcvt.s32.f32 %v1158_v36  ;;  %v984_v46 = vsel %vm983_vm7, %v979_v43, inf  ;;  %v940_v12 = vshra.s32 %v924_v3, 16 }
0x17d7   :  { %v1045_v55 = vadd.s32 %v1044_v49, %v1042_v10  ;;  %v939_v11 = vand.u32 65535, %v924_v3  ;;  %vm814_vm7 = vcmp.ge.f32.partialorder %v1697_v37, %v1702_v39 }
0x17d8   :  { %1161 = vadd.xlane.f32.xlu2 %v1159_v31  ;;  %1163 = vadd.xlane.f32.xlu1 %v1160_v34  ;;  %v942_v21 = vcvt.s32.f32 %v940_v12  ;;  %v989_v31 = vshll.u32 %v988_v18, 16 }
0x17d9   :  { %v1170_v59 = vperm.slane %v1045_v55, %v1547_v13 }
0x17db   :  { %v1172_v1 = vsel %vm792_vm0, %v1171_v2, %v1170_v59 }
0x17e0   :  { %985 = vmin.xlane.f32.xlu2 %v984_v46  ;;  %995 = vmin.xlane.f32.xlu1 %v994_v44 }
0x184b   :  { %v1162_v14 = vpop.xlane.xlu2 %1161  ;;  %v1164_v56 = vpop.xlane.xlu1 %1163 }
0x184c   :  { %v1166_v58 = vcvt.f32.s32 %v1164_v56  ;;  %v1165_v60 = vcvt.f32.s32 %v1162_v14  ;;  %v941_v56 = vcvt.s32.f32 %v939_v11  ;;  %v816_v11 = vsel %vm814_vm7, %v1547_v13, 128 }
0x184d   :  { %vm1287_vm7 = vcmask 48128  }
0x184e   :  { %v1167_v27 = vshll.u32 %v1166_v58, 16  ;;  %v869_v58 = vsel %vm867_vm5, %v1547_v13, 128  ;;  %vm757_vm5 = vcmp.ge.f32.partialorder %v1679_v22, %v1684_v23 }
0x184f   :  { %v872_v2 = vshra.s32 %v869_v58, 16 }
0x1850   :  { %v1803_v17 = vadd.s32 %v1167_v27, %v1165_v60 }
0x1852   :  { %vm1169_vm2 = vcmp.eq.s32.totalorder %v1547_v13, %v1803_v17 }
0x1853   :  { %v996_v8 = vpop.xlane.xlu1 %995  ;;  %v1173_v5 = vsel %vm1169_vm2, %v1172_v1, 0  ;;  %v986_v29 = vpop.xlane.xlu2 %985 }
0x1854   :  { %vm997_vm3 = vcmp.eq.f32.partialorder %v994_v44, %v996_v8  ;;  %v1174_v41 = vsel %vm1155_vm14, %v1173_v5, 0  ;;  %v1002_v30 = vcvt.f32.s32 %v996_v8  ;;  %v987_v62 = vcvt.f32.s32 %v986_v29 }
0x1855   :  { %v998_v9 = vsel %vm997_vm3, %v993_v4, inf  ;;  %v1175_v15 = vand.u32 65535, %v1174_v41  ;;  %v1176_v16 = vshrl.u32 %v1174_v41, 16  ;;  %v925_v44 = vand.u32 65535, %v923_v6 }
0x1856   :  { %999 = vmin.xlane.f32.xlu0 %v998_v9  ;;  %v1003_v32 = vshll.u32 %v1002_v30, 16  ;;  %v990_v42 = vadd.s32 %v989_v31, %v987_v62  ;;  %v886_v8 = vshra.s32 %v870_v0, 16  ;;  %v874_v4 = vcvt.s32.f32 %v872_v2 }
0x1857   :  { %v1177_v61 = vcvt.s32.f32 %v1175_v15  ;;  %v1178_v63 = vcvt.s32.f32 %v1176_v16  ;;  %v927_v51 = vcvt.s32.f32 %v925_v44  ;;  %v885_v62 = vand.u32 65535, %v870_v0 }
0x1858   :  { %v1188_v10 = vperm.slane %v990_v42, %v1547_v13  ;;  %v888_v5 = vcvt.s32.f32 %v886_v8  ;;  %v815_v44 = vsel %vm813_vm12, %v1547_v13, 128  ;;  %vm1277_vm12 = vcmask 7168  }
0x1859   :  { %1179 = vadd.xlane.f32.xlu2 %v1177_v61  ;;  %1181 = vadd.xlane.f32.xlu1 %v1178_v63  ;;  %v887_v42 = vcvt.s32.f32 %v885_v62  ;;  %v817_v2 = vand.u32 65535, %v815_v44 }
0x185e   :  { %929 = vmin.xlane.f32.xlu0 %v928_v19 }
0x1861   :  { %943 = vmin.xlane.f32.xlu1 %v942_v21 }
0x18c9   :  { %v1000_v45 = vpop.xlane.xlu0 %999 }
0x18ca   :  { %v1001_v36 = vcvt.f32.s32 %v1000_v45 }
0x18cc   :  { %v1004_v34 = vadd.s32 %v1003_v32, %v1001_v36  ;;  %v1180_v33 = vpop.xlane.xlu2 %1179  ;;  %v1182_v40 = vpop.xlane.xlu1 %1181 }
0x18cd   :  { %v1184_v43 = vcvt.f32.s32 %v1182_v40  ;;  %v1183_v47 = vcvt.f32.s32 %v1180_v33 }
0x18ce   :  { %v1189_v46 = vperm.slane %v1004_v34, %v1547_v13 }
0x18cf   :  { %v1185_v48 = vshll.u32 %v1184_v43, 16 }
0x18d0   :  { %v1190_v55 = vsel %vm792_vm0, %v1189_v46, %v1188_v10  ;;  %v818_v10 = vshra.s32 %v815_v44, 16 }
0x18d1   :  { %v1817_v49 = vadd.s32 %v1185_v48, %v1183_v47  ;;  %v930_v26 = vpop.xlane.xlu0 %929 }
0x18d2   :  { %vm931_vm8 = vcmp.eq.f32.partialorder %v928_v19, %v930_v26  ;;  %v936_v9 = vcvt.f32.s32 %v930_v26  ;;  %v871_v19 = vand.u32 65535, %v869_v58 }
0x18d3   :  { %v932_v54 = vsel %vm931_vm8, %v927_v51, inf  ;;  %vm1187_vm9 = vcmp.eq.s32.totalorder %v1547_v13, %v1817_v49  ;;  %v832_v51 = vshra.s32 %v816_v11, 16 }
0x18d4   :  { %933 = vmin.xlane.f32.xlu2 %v932_v54  ;;  %v944_v14 = vpop.xlane.xlu1 %943  ;;  %v1191_v57 = vsel %vm1187_vm9, %v1190_v55, 0  ;;  %v937_v61 = vshll.u32 %v936_v9, 16  ;;  %v873_v31 = vcvt.s32.f32 %v871_v19  ;;  %v820_v54 = vcvt.s32.f32 %v818_v10 }
0x18d5   :  { %vm945_vm10 = vcmp.eq.f32.partialorder %v942_v21, %v944_v14  ;;  %v1192_v59 = vsel %vm1155_vm14, %v1191_v57, 0  ;;  %v950_v6 = vcvt.f32.s32 %v944_v14  ;;  %v834_v55 = vcvt.s32.f32 %v832_v51 }
0x18d6   :  { %v946_v50 = vsel %vm945_vm10, %v941_v56, inf  ;;  %v1194_v25 = vshrl.u32 %v1192_v59, 16  ;;  %v1193_v60 = vand.u32 65535, %v1192_v59 }
0x18d7   :  { %947 = vmin.xlane.f32.xlu0 %v946_v50  ;;  %v951_v15 = vshll.u32 %v950_v6, 16  ;;  %v831_v6 = vand.u32 65535, %v816_v11 }
0x18d8   :  { %v1196_v27 = vcvt.s32.f32 %v1194_v25  ;;  %v1195_v1 = vcvt.s32.f32 %v1193_v60 }
0x18da   :  { %1199 = vadd.xlane.f32.xlu1 %v1196_v27 }
0x18dc   :  { %1197 = vadd.xlane.f32.xlu2 %v1195_v1 }
0x18df   :  { %875 = vmin.xlane.f32.xlu0 %v874_v4 }
0x18e2   :  { %889 = vmin.xlane.f32.xlu1 %v888_v5 }
0x1947   :  { %v934_v41 = vpop.xlane.xlu2 %933 }
0x1948   :  { %v935_v52 = vcvt.f32.s32 %v934_v41 }
0x194a   :  { %v948_v53 = vpop.xlane.xlu0 %947  ;;  %v938_v7 = vadd.s32 %v937_v61, %v935_v52 }
0x194b   :  { %v949_v16 = vcvt.f32.s32 %v948_v53  ;;  %v819_v53 = vcvt.s32.f32 %v817_v2 }
0x194c   :  { %v1206_v45 = vperm.slane %v938_v7, %v1547_v13  ;;  %v758_v7 = vsel %vm756_vm1, %v1547_v13, 128  ;;  %vm1289_vm1 = vcmask 56320  }
0x194d   :  { %v952_v63 = vadd.s32 %v951_v15, %v949_v16  ;;  %v1200_v3 = vpop.xlane.xlu1 %1199 }
0x194e   :  { %v1202_v12 = vcvt.f32.s32 %v1200_v3 }
0x194f   :  { %v1198_v21 = vpop.xlane.xlu2 %1197  ;;  %v1207_v29 = vperm.slane %v952_v63, %v1547_v13  ;;  %v833_v63 = vcvt.s32.f32 %v831_v6 }
0x1950   :  { %v1203_v30 = vshll.u32 %v1202_v12, 16  ;;  %v1201_v18 = vcvt.f32.s32 %v1198_v21 }
0x1951   :  { %v1208_v33 = vsel %vm792_vm0, %v1207_v29, %v1206_v45  ;;  %v759_v29 = vsel %vm757_vm5, %v1547_v13, 128 }
0x1952   :  { %v1831_v32 = vadd.s32 %v1203_v30, %v1201_v18  ;;  %v876_v36 = vpop.xlane.xlu0 %875  ;;  %v761_v30 = vshra.s32 %v758_v7, 16  ;;  %v775_v62 = vshra.s32 %v759_v29, 16  ;;  %v774_v51 = vand.u32 65535, %v759_v29 }
0x1953   :  { %vm877_vm13 = vcmp.eq.f32.partialorder %v874_v4, %v876_v36  ;;  %v882_v57 = vcvt.f32.s32 %v876_v36 }
0x1954   :  { %vm1205_vm15 = vcmp.eq.s32.totalorder %v1547_v13, %v1831_v32  ;;  %v878_v34 = vsel %vm877_vm13, %v873_v31, inf  ;;  %v763_v45 = vcvt.s32.f32 %v761_v30  ;;  %v777_v36 = vcvt.s32.f32 %v775_v62 }
0x1955   :  { %879 = vmin.xlane.f32.xlu2 %v878_v34  ;;  %v890_v40 = vpop.xlane.xlu1 %889  ;;  %v1209_v43 = vsel %vm1205_vm15, %v1208_v33, 0  ;;  %v883_v50 = vshll.u32 %v882_v57, 16  ;;  %vm1279_vm13 = vcmask 15360   ;;  %vm1281_vm15 = vcmask 23552  }
0x1956   :  { %vm891_vm6 = vcmp.eq.f32.partialorder %v888_v5, %v890_v40  ;;  %v1210_v46 = vsel %vm1155_vm14, %v1209_v43, 0  ;;  %v896_v14 = vcvt.f32.s32 %v890_v40 }
0x1957   :  { %v892_v35 = vsel %vm891_vm6, %v887_v42, inf  ;;  %v1212_v38 = vshrl.u32 %v1210_v46, 16  ;;  %v1211_v47 = vand.u32 65535, %v1210_v46  ;;  %vm1285_vm6 = vcmask 39936  }
0x1958   :  { %893 = vmin.xlane.f32.xlu0 %v892_v35  ;;  %v897_v58 = vshll.u32 %v896_v14, 16 }
0x1959   :  { %v1214_v48 = vcvt.s32.f32 %v1212_v38  ;;  %v1213_v26 = vcvt.s32.f32 %v1211_v47  ;;  %v760_v47 = vand.u32 65535, %v758_v7 }
0x195b   :  { %1217 = vadd.xlane.f32.xlu1 %v1214_v48 }
0x195d   :  { %1215 = vadd.xlane.f32.xlu2 %v1213_v26 }
0x1960   :  { %821 = vmin.xlane.f32.xlu0 %v820_v54 }
0x1963   :  { %835 = vmin.xlane.f32.xlu1 %v834_v55 }
0x19c8   :  { %v880_v56 = vpop.xlane.xlu2 %879 }
0x19c9   :  { %v881_v37 = vcvt.f32.s32 %v880_v56  ;;  %v762_v56 = vcvt.s32.f32 %v760_v47 }
0x19cb   :  { %v894_v39 = vpop.xlane.xlu0 %893  ;;  %v884_v27 = vadd.s32 %v883_v50, %v881_v37 }
0x19cc   :  { %v895_v59 = vcvt.f32.s32 %v894_v39 }
0x19cd   :  { %v1224_v41 = vperm.slane %v884_v27, %v1547_v13 }
0x19ce   :  { %v898_v25 = vadd.s32 %v897_v58, %v895_v59  ;;  %v1218_v60 = vpop.xlane.xlu1 %1217  ;;  %v776_v58 = vcvt.s32.f32 %v774_v51 }
0x19cf   :  { %v1220_v0 = vcvt.f32.s32 %v1218_v60 }
0x19d0   :  { %v1216_v1 = vpop.xlane.xlu2 %1215  ;;  %v1225_v8 = vperm.slane %v898_v25, %v1547_v13 }
0x19d1   :  { %v1221_v4 = vshll.u32 %v1220_v0, 16  ;;  %v1219_v5 = vcvt.f32.s32 %v1216_v1 }
0x19d2   :  { %v1226_v16 = vsel %vm792_vm0, %v1225_v8, %v1224_v41 }
0x19d3   :  { %v1845_v9 = vadd.s32 %v1221_v4, %v1219_v5  ;;  %v822_v52 = vpop.xlane.xlu0 %821 }
0x19d4   :  { %vm823_vm2 = vcmp.eq.f32.partialorder %v820_v54, %v822_v52  ;;  %v828_v33 = vcvt.f32.s32 %v822_v52 }
0x19d5   :  { %vm1223_vm3 = vcmp.eq.s32.totalorder %v1547_v13, %v1845_v9  ;;  %v824_v15 = vsel %vm823_vm2, %v819_v53, inf }
0x19d6   :  { %825 = vmin.xlane.f32.xlu2 %v824_v15  ;;  %v836_v61 = vpop.xlane.xlu1 %835  ;;  %v1227_v3 = vsel %vm1223_vm3, %v1226_v16, 0  ;;  %v829_v43 = vshll.u32 %v828_v33, 16 }
0x19d7   :  { %vm837_vm4 = vcmp.eq.f32.partialorder %v834_v55, %v836_v61  ;;  %v1228_v12 = vsel %vm1155_vm14, %v1227_v3, 0  ;;  %v842_v31 = vcvt.f32.s32 %v836_v61 }
0x19d8   :  { %v838_v20 = vsel %vm837_vm4, %v833_v63, inf  ;;  %v1230_v24 = vshrl.u32 %v1228_v12, 16  ;;  %v1229_v19 = vand.u32 65535, %v1228_v12 }
0x19d9   :  { %839 = vmin.xlane.f32.xlu0 %v838_v20  ;;  %v843_v40 = vshll.u32 %v842_v31, 16 }
0x19da   :  { %v1232_v21 = vcvt.s32.f32 %v1230_v24  ;;  %v1231_v18 = vcvt.s32.f32 %v1229_v19 }
0x19dc   :  { %1235 = vadd.xlane.f32.xlu1 %v1232_v21 }
0x19de   :  { %1233 = vadd.xlane.f32.xlu2 %v1231_v18 }
0x19e1   :  { %764 = vmin.xlane.f32.xlu0 %v763_v45 }
0x19e4   :  { %778 = vmin.xlane.f32.xlu1 %v777_v36 }
0x1a49   :  { %v826_v34 = vpop.xlane.xlu2 %825 }
0x1a4a   :  { %v827_v22 = vcvt.f32.s32 %v826_v34 }
0x1a4c   :  { %v840_v23 = vpop.xlane.xlu0 %839  ;;  %v830_v35 = vadd.s32 %v829_v43, %v827_v22 }
0x1a4d   :  { %v841_v42 = vcvt.f32.s32 %v840_v23 }
0x1a4e   :  { %v1242_v54 = vperm.slane %v830_v35, %v1547_v13 }
0x1a4f   :  { %v844_v44 = vadd.s32 %v843_v40, %v841_v42  ;;  %v1236_v46 = vpop.xlane.xlu1 %1235 }
0x1a50   :  { %v1238_v38 = vcvt.f32.s32 %v1236_v46 }
0x1a51   :  { %v1234_v48 = vpop.xlane.xlu2 %1233  ;;  %v1243_v11 = vperm.slane %v844_v44, %v1547_v13 }
0x1a52   :  { %v1239_v10 = vshll.u32 %v1238_v38, 16  ;;  %v1237_v26 = vcvt.f32.s32 %v1234_v48 }
0x1a53   :  { %v1244_v37 = vsel %vm792_vm0, %v1243_v11, %v1242_v54 }
0x1a54   :  { %v1240_v55 = vadd.s32 %v1239_v10, %v1237_v26  ;;  %v765_v14 = vpop.xlane.xlu0 %764 }
0x1a55   :  { %vm766_vm8 = vcmp.eq.f32.partialorder %v763_v45, %v765_v14  ;;  %v771_v4 = vcvt.f32.s32 %v765_v14 }
0x1a56   :  { %vm1241_vm9 = vcmp.eq.s32.totalorder %v1547_v13, %v1240_v55  ;;  %v767_v57 = vsel %vm766_vm8, %v762_v56, inf }
0x1a57   :  { %768 = vmin.xlane.f32.xlu2 %v767_v57  ;;  %v779_v39 = vpop.xlane.xlu1 %778  ;;  %v1245_v59 = vsel %vm1241_vm9, %v1244_v37, 0  ;;  %v772_v53 = vshll.u32 %v771_v4, 16 }
0x1a58   :  { %vm780_vm10 = vcmp.eq.f32.partialorder %v777_v36, %v779_v39  ;;  %v1246_v50 = vsel %vm1155_vm14, %v1245_v59, 0  ;;  %v785_v1 = vcvt.f32.s32 %v779_v39 }
0x1a59   :  { %v781_v25 = vsel %vm780_vm10, %v776_v58, inf  ;;  %v1248_v60 = vshrl.u32 %v1246_v50, 16  ;;  %v1247_v27 = vand.u32 65535, %v1246_v50 }
0x1a5a   :  { %782 = vmin.xlane.f32.xlu0 %v781_v25  ;;  %v786_v41 = vshll.u32 %v785_v1, 16 }
0x1a5b   :  { %v1250_v0 = vcvt.s32.f32 %v1248_v60  ;;  %v1249_v2 = vcvt.s32.f32 %v1247_v27 }
0x1a5d   :  { %1253 = vadd.xlane.f32.xlu1 %v1250_v0 }
0x1a5f   :  { %1251 = vadd.xlane.f32.xlu2 %v1249_v2 }
0x1aca   :  { %v769_v8 = vpop.xlane.xlu2 %768 }
0x1acb   :  { %v770_v5 = vcvt.f32.s32 %v769_v8 }
0x1acd   :  { %v783_v6 = vpop.xlane.xlu0 %782  ;;  %v773_v61 = vadd.s32 %v772_v53, %v770_v5 }
0x1ace   :  { %v784_v52 = vcvt.f32.s32 %v783_v6 }
0x1acf   :  { %v1260_v24 = vperm.slane %v773_v61, %v1547_v13 }
0x1ad0   :  { %v787_v15 = vadd.s32 %v786_v41, %v784_v52  ;;  %v1254_v16 = vpop.xlane.xlu1 %1253 }
0x1ad1   :  { %v1256_v63 = vcvt.f32.s32 %v1254_v16 }
0x1ad2   :  { %v1252_v3 = vpop.xlane.xlu2 %1251  ;;  %v1261_v7 = vperm.slane %v787_v15, %v1547_v13 }
0x1ad3   :  { %v1257_v12 = vshll.u32 %v1256_v63, 16  ;;  %v1255_v20 = vcvt.f32.s32 %v1252_v3 }
0x1ad4   :  { %v1262_v21 = vsel %vm792_vm0, %v1261_v7, %v1260_v24  ;;  %vm1283_vm0 = vcmask 31744  }
0x1ad5   :  { %v1258_v19 = vadd.s32 %v1257_v12, %v1255_v20 }
0x1ad7   :  { %vm1259_vm11 = vcmp.eq.s32.totalorder %v1547_v13, %v1258_v19 }
0x1ad8   :  { %v1263_v29 = vsel %vm1259_vm11, %v1262_v21, 0 }
0x1ad9   :  { %v1264_v30 = vsel %vm1155_vm14, %v1263_v29, 0 }
0x1ada   :  { %v1266_v18 = vshrl.u32 %v1264_v30, 16  ;;  %v1265_v62 = vand.u32 65535, %v1264_v30 }
0x1adc   :  { %v1268_v45 = vcvt.s32.f32 %v1266_v18  ;;  %v1267_v36 = vcvt.s32.f32 %v1265_v62 }
0x1ade   :  { %1271 = vadd.xlane.f32.xlu0 %v1268_v45  ;;  %1269 = vadd.xlane.f32.xlu1 %v1267_v36 }
0x1b51   :  { %v1272_v31 = vpop.xlane.xlu0 %1271  ;;  %v1270_v34 = vpop.xlane.xlu1 %1269 }
0x1b52   :  { %v1274_v33 = vcvt.f32.s32 %v1272_v31  ;;  %v1273_v23 = vcvt.f32.s32 %v1270_v34 }
0x1b54   :  { %v1275_v22 = vshll.u32 %v1274_v33, 16 }
0x1b56   :  { %v1276_v40 = vadd.s32 %v1275_v22, %v1273_v23 }
0x1b58   :  { %v1278_v13 = vsel %vm1277_vm12, %v1276_v40, %v1258_v19 }
0x1b59   :  { %v1280_v42 = vsel %vm1279_vm13, %v1278_v13, %v1240_v55 }
0x1b5a   :  { %v1282_v43 = vsel %vm1281_vm15, %v1280_v42, %v1845_v9 }
0x1b5b   :  { %v1284_v44 = vsel %vm1283_vm0, %v1282_v43, %v1831_v32 }
0x1b5c   :  { %v1286_v46 = vsel %vm1285_vm6, %v1284_v44, %v1817_v49 }
0x1b5d   :  { %v1288_v35 = vsel %vm1287_vm7, %v1286_v46, %v1803_v17 }
0x1b5e   :  { %v1290_v38 = vsel %vm1289_vm1, %v1288_v35, %v1793_v28 }
0x1b5f   :  { %1291 = vst.msk [vmem:[#allocation3] sm:$0x3] %vm1155_vm14, %v1290_v38 }
0x1b60   :  { %1302 = dma.vmem_to_hbm [thread:$0]  %s1298_s8, 32, %s1300_s23, [#allocation4]  }
0x1b61   :  { %1423 = dma.done.wait [#allocation4], 32  }
0x1b62   :  { %1424 = vsyncadd [#allocation4], 4294967264 }
0x1b63   :  { %1307 = vsyncpa [#allocation4], 1 }

</bundles_post_ra>
